<compile_context>
chip_gen: v5e
topology: v5e:2x2
jax: 0.10.0
libtpu: 0.0.40
codegen_flags: <defaults>
</compile_context>

<pallas_src>
import jax
import jax.numpy as jnp
from jax import lax
from jax.experimental import pallas as pl
from jax.experimental.pallas import tpu as pltpu

EPS = 1e-5


def conv1x1_bn_kernel(x_ref, w_ref, gb_ref, o_ref):
    # x_ref : (Cin, M)    f32,  M = N*H*W
    # w_ref : (Cout, Cin) f32
    # gb_ref: (Cout, 2)   f32   [:, 0] = gamma, [:, 1] = beta
    # o_ref : (Cout, M)   f32
    cout, m = o_ref.shape
    inv_m = jnp.float32(1.0 / m)

    # In-kernel bf16 cast (saves the wrapper-side f32->bf16 HBM round trip);
    # accumulation stays in f32 on the MXU.
    x_bf = x_ref[...].astype(jnp.bfloat16)
    w_bf = w_ref[...].astype(jnp.bfloat16)
    y = jnp.dot(w_bf, x_bf, preferred_element_type=jnp.float32)   # (Cout, M) f32

    # Stage y in the f32 output buffer so the stats/normalize epilogue can be
    # strip-mined over row groups (bounds the vreg live range).
    o_ref[...] = y

    # Row-strip size: a multiple of 8 sublanes that divides Cout (48 -> 16).
    strip = cout
    for cand in (16, 8):
        if cout % cand == 0:
            strip = cand
            break
    n_strips = cout // strip

    def strip_body(s, carry):
        r = pl.multiple_of(s * strip, strip)
        ys = o_ref[pl.ds(r, strip), :]                  # (strip, M) f32
        gbs = gb_ref[pl.ds(r, strip), :]                # (strip, 2)
        gamma = gbs[:, 0:1]                             # (strip, 1)
        beta = gbs[:, 1:2]                              # (strip, 1)

        mean = jnp.sum(ys, axis=-1, keepdims=True) * inv_m
        centered = ys - mean
        var = jnp.sum(centered * centered, axis=-1, keepdims=True) * inv_m
        scale = gamma * lax.rsqrt(var + EPS)            # rsqrt -> EUP (free slot)

        o_ref[pl.ds(r, strip), :] = centered * scale + beta
        return carry

    lax.fori_loop(0, n_strips, strip_body, 0, unroll=True)


def conv1x1_batchnorm(x_nchw, weight, gamma, beta):
    """Conv2d(Cin->Cout, 1x1, bias=False) + training-mode BatchNorm2d.

    x_nchw: (N, Cin, H, W) f32; weight: (Cout, Cin, 1, 1); gamma/beta: (Cout,).
    Returns (N, Cout, H, W) f32.
    """
    n, cin, h, w = x_nchw.shape
    cout = weight.shape[0]
    m = n * h * w

    # NCHW -> (Cin, M).  For N == 1 this is a pure reshape (the transpose only
    # moves a size-1 axis, which XLA elides): no HBM data movement, and no
    # wrapper-side dtype cast either.
    xm = x_nchw.reshape(n, cin, h * w).transpose(1, 0, 2).reshape(cin, m)
    wm = weight.reshape(cout, cin)
    gb = jnp.stack(
        [gamma.astype(jnp.float32), beta.astype(jnp.float32)], axis=-1)  # (Cout, 2)

    itemsize = 4
    cost = pl.CostEstimate(
        flops=2 * cout * cin * m,
        transcendentals=cout,  # one rsqrt per output channel
        bytes_accessed=(cin * m + cout * cin + cout * 2 + cout * m) * itemsize,
    )

    out_cm = pl.pallas_call(
        conv1x1_bn_kernel,
        out_shape=jax.ShapeDtypeStruct((cout, m), jnp.float32),
        grid=(1,),
        in_specs=[
            pl.BlockSpec((cin, m), lambda i: (0, 0)),
            pl.BlockSpec((cout, cin), lambda i: (0, 0)),
            pl.BlockSpec((cout, 2), lambda i: (0, 0)),
        ],
        out_specs=pl.BlockSpec((cout, m), lambda i: (0, 0)),
        compiler_params=pltpu.CompilerParams(
            dimension_semantics=("arbitrary",)),
        cost_estimate=cost,
    )(xm, wm, gb)

    # (Cout, M) -> NCHW  (again free for N == 1).
    return out_cm.reshape(cout, n, h, w).transpose(1, 0, 2, 3)


if __name__ == "__main__":
    key = jax.random.PRNGKey(0)
    kx, kw = jax.random.split(key)

    # Shapes implied by the module: 1x1 conv with fixed 144 -> 48 channels.
    N, CIN, H, W = 1, 144, 28, 28
    COUT = 48

    x = jax.random.normal(kx, (N, CIN, H, W), dtype=jnp.float32)
    # Deterministic synthetic conv weight (kaiming-ish scale); BN affine params.
    weight = jax.random.normal(kw, (COUT, CIN, 1, 1), dtype=jnp.float32) * (1.0 / (CIN ** 0.5))
    gamma = jnp.ones((COUT,), dtype=jnp.float32)
    beta = jnp.zeros((COUT,), dtype=jnp.float32)

    out = conv1x1_batchnorm(x, weight, gamma, beta)
    jax.block_until_ready(out)

    # Pure-JAX reference of the same math (bf16 matmul inputs, f32 accumulation).
    xm = (x.reshape(N, CIN, H * W).transpose(1, 0, 2)
            .reshape(CIN, N * H * W).astype(jnp.bfloat16))
    wm = weight.reshape(COUT, CIN).astype(jnp.bfloat16)
    y_ref = jnp.dot(wm, xm, preferred_element_type=jnp.float32)          # (Cout, M)
    mean = y_ref.mean(axis=-1, keepdims=True)
    var = ((y_ref - mean) ** 2).mean(axis=-1, keepdims=True)
    ref = (y_ref - mean) * jax.lax.rsqrt(var + EPS) * gamma[:, None] + beta[:, None]
    ref = ref.reshape(COUT, N, H, W).transpose(1, 0, 2, 3)

    assert jnp.allclose(out, ref, atol=5e-3, rtol=5e-3), float(jnp.max(jnp.abs(out - ref)))

    print("KERNEL_OK")
</pallas_src>

<mosaic_0001>
module attributes {stable_mosaic.version = 11 : i64} {
  func.func @conv1x1_bn_kernel(%arg0: i32, %arg1: memref<144x784xf32, #tpu.memory_space<vmem>>, %arg2: memref<48x144xf32, #tpu.memory_space<vmem>>, %arg3: memref<48x2xf32, #tpu.memory_space<vmem>>, %arg4: memref<48x784xf32, #tpu.memory_space<vmem>>) attributes {dimension_semantics = [#tpu.dimension_semantics<arbitrary>], iteration_bounds = array<i64: 1>, scalar_prefetch = 0 : i64, scratch_operands = 0 : i64, tpu.core_type = #tpu.core_type<tc>, window_params = [{pipeline_mode = #tpu.pipeline_mode<synchronous>, transform_indices = @transform_0, window_bounds = array<i64: 144, 784>}, {pipeline_mode = #tpu.pipeline_mode<synchronous>, transform_indices = @transform_1, window_bounds = array<i64: 48, 144>}, {pipeline_mode = #tpu.pipeline_mode<synchronous>, transform_indices = @transform_2, window_bounds = array<i64: 48, 2>}, {pipeline_mode = #tpu.pipeline_mode<synchronous>, transform_indices = @transform_3, window_bounds = array<i64: 48, 784>}]} {
    %c0 = arith.constant 0 : index
    %c0_0 = arith.constant 0 : index
    %0 = vector.load %arg1[%c0, %c0_0] : memref<144x784xf32, #tpu.memory_space<vmem>>, vector<144x784xf32>
    %1 = arith.truncf %0 : vector<144x784xf32> to vector<144x784xbf16>
    %c0_1 = arith.constant 0 : index
    %c0_2 = arith.constant 0 : index
    %2 = vector.load %arg2[%c0_1, %c0_2] : memref<48x144xf32, #tpu.memory_space<vmem>>, vector<48x144xf32>
    %3 = arith.truncf %2 : vector<48x144xf32> to vector<48x144xbf16>
    %cst = arith.constant dense<0.000000e+00> : vector<48x784xf32>
    %4 = tpu.matmul %3, %1, %cst {dimension_numbers = #tpu.dot_dimension_numbers<[1], [0], [0], [1], [0, 0, 1, 1], [], []>} : vector<48x144xbf16>, vector<144x784xbf16>, vector<48x784xf32> -> vector<48x784xf32>
    %c0_3 = arith.constant 0 : index
    %c0_4 = arith.constant 0 : index
    %5 = vector.load %arg4[%c0_3, %c0_4] : memref<48x784xf32, #tpu.memory_space<vmem>>, vector<48x784xf32>
    tpu.vector_store %arg4[%c0_3, %c0_4], %4 {strides = array<i32>} : memref<48x784xf32, #tpu.memory_space<vmem>>, vector<48x784xf32>,
    %cst_5 = arith.constant 0.00127551018 : f32
    %c0_i32 = arith.constant 0 : i32
    %c16_i32 = arith.constant 16 : i32
    %6 = arith.muli %c0_i32, %c16_i32 : i32
    %7 = tpu.assume_multiple %6, 16 : i32
    %8 = arith.index_cast %7 : i32 to index
    %c0_6 = arith.constant 0 : index
    %9 = vector.load %arg4[%8, %c0_6] : memref<48x784xf32, #tpu.memory_space<vmem>>, vector<16x784xf32>
    %10 = arith.index_cast %7 : i32 to index
    %c0_7 = arith.constant 0 : index
    %11 = vector.load %arg3[%10, %c0_7] : memref<48x2xf32, #tpu.memory_space<vmem>>, vector<16x2xf32>
    %12 = vector.extract_strided_slice %11 {offsets = [0, 0], sizes = [16, 1], strides = [1, 1]} : vector<16x2xf32> to vector<16x1xf32>
    %13 = vector.extract_strided_slice %11 {offsets = [0, 1], sizes = [16, 1], strides = [1, 1]} : vector<16x2xf32> to vector<16x1xf32>
    %cst_8 = arith.constant dense<0.000000e+00> : vector<16xf32>
    %14 = vector.multi_reduction <add>, %9, %cst_8 [1] : vector<16x784xf32> to vector<16xf32>
    %15 = vector.shape_cast %14 : vector<16xf32> to vector<16x1xf32>
    %16 = vector.broadcast %cst_5 : f32 to vector<16x1xf32>
    %17 = arith.mulf %15, %16 : vector<16x1xf32>
    %18 = vector.broadcast %17 : vector<16x1xf32> to vector<16x784xf32>
    %19 = arith.subf %9, %18 : vector<16x784xf32>
    %20 = arith.mulf %19, %19 : vector<16x784xf32>
    %cst_9 = arith.constant dense<0.000000e+00> : vector<16xf32>
    %21 = vector.multi_reduction <add>, %20, %cst_9 [1] : vector<16x784xf32> to vector<16xf32>
    %22 = vector.shape_cast %21 : vector<16xf32> to vector<16x1xf32>
    %23 = vector.broadcast %cst_5 : f32 to vector<16x1xf32>
    %24 = arith.mulf %22, %23 : vector<16x1xf32>
    %cst_10 = arith.constant 9.99999974E-6 : f32
    %25 = vector.broadcast %cst_10 : f32 to vector<16x1xf32>
    %26 = arith.addf %24, %25 : vector<16x1xf32>
    %27 = math.rsqrt %26 : vector<16x1xf32>
    %28 = arith.mulf %12, %27 : vector<16x1xf32>
    %29 = vector.broadcast %28 : vector<16x1xf32> to vector<16x784xf32>
    %30 = arith.mulf %19, %29 : vector<16x784xf32>
    %31 = vector.broadcast %13 : vector<16x1xf32> to vector<16x784xf32>
    %32 = arith.addf %30, %31 : vector<16x784xf32>
    %33 = arith.index_cast %7 : i32 to index
    %c0_11 = arith.constant 0 : index
    %34 = vector.load %arg4[%33, %c0_11] : memref<48x784xf32, #tpu.memory_space<vmem>>, vector<16x784xf32>
    tpu.vector_store %arg4[%33, %c0_11], %32 {strides = array<i32>} : memref<48x784xf32, #tpu.memory_space<vmem>>, vector<16x784xf32>,
    %c1_i32 = arith.constant 1 : i32
    %c16_i32_12 = arith.constant 16 : i32
    %35 = arith.muli %c1_i32, %c16_i32_12 : i32
    %36 = tpu.assume_multiple %35, 16 : i32
    %37 = arith.index_cast %36 : i32 to index
    %c0_13 = arith.constant 0 : index
    %38 = vector.load %arg4[%37, %c0_13] : memref<48x784xf32, #tpu.memory_space<vmem>>, vector<16x784xf32>
    %39 = arith.index_cast %36 : i32 to index
    %c0_14 = arith.constant 0 : index
    %40 = vector.load %arg3[%39, %c0_14] : memref<48x2xf32, #tpu.memory_space<vmem>>, vector<16x2xf32>
    %41 = vector.extract_strided_slice %40 {offsets = [0, 0], sizes = [16, 1], strides = [1, 1]} : vector<16x2xf32> to vector<16x1xf32>
    %42 = vector.extract_strided_slice %40 {offsets = [0, 1], sizes = [16, 1], strides = [1, 1]} : vector<16x2xf32> to vector<16x1xf32>
    %cst_15 = arith.constant dense<0.000000e+00> : vector<16xf32>
    %43 = vector.multi_reduction <add>, %38, %cst_15 [1] : vector<16x784xf32> to vector<16xf32>
    %44 = vector.shape_cast %43 : vector<16xf32> to vector<16x1xf32>
    %45 = vector.broadcast %cst_5 : f32 to vector<16x1xf32>
    %46 = arith.mulf %44, %45 : vector<16x1xf32>
    %47 = vector.broadcast %46 : vector<16x1xf32> to vector<16x784xf32>
    %48 = arith.subf %38, %47 : vector<16x784xf32>
    %49 = arith.mulf %48, %48 : vector<16x784xf32>
    %cst_16 = arith.constant dense<0.000000e+00> : vector<16xf32>
    %50 = vector.multi_reduction <add>, %49, %cst_16 [1] : vector<16x784xf32> to vector<16xf32>
    %51 = vector.shape_cast %50 : vector<16xf32> to vector<16x1xf32>
    %52 = vector.broadcast %cst_5 : f32 to vector<16x1xf32>
    %53 = arith.mulf %51, %52 : vector<16x1xf32>
    %cst_17 = arith.constant 9.99999974E-6 : f32
    %54 = vector.broadcast %cst_17 : f32 to vector<16x1xf32>
    %55 = arith.addf %53, %54 : vector<16x1xf32>
    %56 = math.rsqrt %55 : vector<16x1xf32>
    %57 = arith.mulf %41, %56 : vector<16x1xf32>
    %58 = vector.broadcast %57 : vector<16x1xf32> to vector<16x784xf32>
    %59 = arith.mulf %48, %58 : vector<16x784xf32>
    %60 = vector.broadcast %42 : vector<16x1xf32> to vector<16x784xf32>
    %61 = arith.addf %59, %60 : vector<16x784xf32>
    %62 = arith.index_cast %36 : i32 to index
    %c0_18 = arith.constant 0 : index
    %63 = vector.load %arg4[%62, %c0_18] : memref<48x784xf32, #tpu.memory_space<vmem>>, vector<16x784xf32>
    tpu.vector_store %arg4[%62, %c0_18], %61 {strides = array<i32>} : memref<48x784xf32, #tpu.memory_space<vmem>>, vector<16x784xf32>,
    %c2_i32 = arith.constant 2 : i32
    %c16_i32_19 = arith.constant 16 : i32
    %64 = arith.muli %c2_i32, %c16_i32_19 : i32
    %65 = tpu.assume_multiple %64, 16 : i32
    %66 = arith.index_cast %65 : i32 to index
    %c0_20 = arith.constant 0 : index
    %67 = vector.load %arg4[%66, %c0_20] : memref<48x784xf32, #tpu.memory_space<vmem>>, vector<16x784xf32>
    %68 = arith.index_cast %65 : i32 to index
    %c0_21 = arith.constant 0 : index
    %69 = vector.load %arg3[%68, %c0_21] : memref<48x2xf32, #tpu.memory_space<vmem>>, vector<16x2xf32>
    %70 = vector.extract_strided_slice %69 {offsets = [0, 0], sizes = [16, 1], strides = [1, 1]} : vector<16x2xf32> to vector<16x1xf32>
    %71 = vector.extract_strided_slice %69 {offsets = [0, 1], sizes = [16, 1], strides = [1, 1]} : vector<16x2xf32> to vector<16x1xf32>
    %cst_22 = arith.constant dense<0.000000e+00> : vector<16xf32>
    %72 = vector.multi_reduction <add>, %67, %cst_22 [1] : vector<16x784xf32> to vector<16xf32>
    %73 = vector.shape_cast %72 : vector<16xf32> to vector<16x1xf32>
    %74 = vector.broadcast %cst_5 : f32 to vector<16x1xf32>
    %75 = arith.mulf %73, %74 : vector<16x1xf32>
    %76 = vector.broadcast %75 : vector<16x1xf32> to vector<16x784xf32>
    %77 = arith.subf %67, %76 : vector<16x784xf32>
    %78 = arith.mulf %77, %77 : vector<16x784xf32>
    %cst_23 = arith.constant dense<0.000000e+00> : vector<16xf32>
    %79 = vector.multi_reduction <add>, %78, %cst_23 [1] : vector<16x784xf32> to vector<16xf32>
    %80 = vector.shape_cast %79 : vector<16xf32> to vector<16x1xf32>
    %81 = vector.broadcast %cst_5 : f32 to vector<16x1xf32>
    %82 = arith.mulf %80, %81 : vector<16x1xf32>
    %cst_24 = arith.constant 9.99999974E-6 : f32
    %83 = vector.broadcast %cst_24 : f32 to vector<16x1xf32>
    %84 = arith.addf %82, %83 : vector<16x1xf32>
    %85 = math.rsqrt %84 : vector<16x1xf32>
    %86 = arith.mulf %70, %85 : vector<16x1xf32>
    %87 = vector.broadcast %86 : vector<16x1xf32> to vector<16x784xf32>
    %88 = arith.mulf %77, %87 : vector<16x784xf32>
    %89 = vector.broadcast %71 : vector<16x1xf32> to vector<16x784xf32>
    %90 = arith.addf %88, %89 : vector<16x784xf32>
    %91 = arith.index_cast %65 : i32 to index
    %c0_25 = arith.constant 0 : index
    %92 = vector.load %arg4[%91, %c0_25] : memref<48x784xf32, #tpu.memory_space<vmem>>, vector<16x784xf32>
    tpu.vector_store %arg4[%91, %c0_25], %90 {strides = array<i32>} : memref<48x784xf32, #tpu.memory_space<vmem>>, vector<16x784xf32>,
    %c3_i32 = arith.constant 3 : i32
    return
  }
  func.func @transform_0(%arg0: i32) -> (i32, i32) {
    %c0_i32 = arith.constant 0 : i32
    %c0_i32_0 = arith.constant 0 : i32
    %c0_i32_1 = arith.constant 0 : i32
    return %c0_i32, %c0_i32_0 : i32, i32
  }
  func.func @transform_1(%arg0: i32) -> (i32, i32) {
    %c0_i32 = arith.constant 0 : i32
    %c0_i32_0 = arith.constant 0 : i32
    %c0_i32_1 = arith.constant 0 : i32
    return %c0_i32, %c0_i32_0 : i32, i32
  }
  func.func @transform_2(%arg0: i32) -> (i32, i32) {
    %c0_i32 = arith.constant 0 : i32
    %c0_i32_0 = arith.constant 0 : i32
    %c0_i32_1 = arith.constant 0 : i32
    return %c0_i32, %c0_i32_0 : i32, i32
  }
  func.func @transform_3(%arg0: i32) -> (i32, i32) {
    %c0_i32 = arith.constant 0 : i32
    %c0_i32_0 = arith.constant 0 : i32
    %c0_i32_1 = arith.constant 0 : i32
    return %c0_i32, %c0_i32_0 : i32, i32
  }
}

</mosaic_0001>

<bundles_post_ra>
// kernel: tpu_custom_call.1
= control target key start
LH: loop header
LB: loop body
LE: loop exit
PB: predicated region body
PF: predicated region fallthrough
CT: control target
= control target key end

     0   :  { %8 = vsyncpa [#allocation3], 0  ;;  %s1913_s0 = inlined_call_operand.hbm [shape: f32[144,784], index: 0, kind: input, shape index: {}]   ;;  %s1914_s1 = inlined_call_operand.hbm [shape: f32[48,144], index: 1, kind: input, shape index: {}]   ;;  %s1915_s2 = inlined_call_operand.vmem [shape: f32[48,2], index: 2, kind: input, shape index: {}]   ;;  %s1916_s3 = inlined_call_operand.hbm [shape: f32[48,784], index: 3, kind: output, shape index: {}]  }
   0x1   :  { %9 = vsyncpa [#allocation6], 0 }
   0x2   :  { %10 = vsyncpa [#allocation4], 0  ;;  %s15_s14 = sshll.u32 %s1913_s0, 4  ;;  %s1317_s15 = smov [#allocation2]   ;;  %s16_s14 = int_to_ptr.hbm [resolvable:$true] %s15_s14 }
   0x3   :  { %s17_s16 = sshll.u32 %s1317_s15, 4  ;;  %s28_s19 = sshll.u32 %s1914_s1, 4  ;;  %s18_s16 = int_to_ptr.vmem [resolvable:$true] %s17_s16  ;;  %s29_s19 = int_to_ptr.hbm [resolvable:$true] %s28_s19 }
   0x4   :  { %s1318_s20 = smov 896   ;;  %s1319_s21 = smov 56  }
   0x5   :  { %23 = dma.hbm_to_vmem [thread:$0]  %s16_s14, 16128, %s18_s16, [#allocation3], %s1318_s20, %s1318_s20, %s1319_s21  }
   0x6   :  { %s1320_s22 = smov [#allocation5]   ;;  %s1321_s24 = smov 256  }
   0x7   :  { %s30_s23 = sshll.u32 %s1320_s22, 4  ;;  %s1322_s0 = smov 16   ;;  %s31_s23 = int_to_ptr.vmem [resolvable:$true] %s30_s23 }
   0x8   :  { %36 = dma.hbm_to_vmem [thread:$0]  %s29_s19, 1536, %s31_s23, [#allocation6], %s1321_s24, %s1321_s24, %s1322_s0  }
   0x9   :  { %1311 = dma.done.wait [#allocation3], 16128  }
   0xa   :  { %1312 = vsyncadd [#allocation3], 4294951168 }
   0xb   :  { %1313 = dma.done.wait [#allocation6], 1536  }
   0xc   :  { %1314 = vsyncadd [#allocation6], 4294965760  ;;  %v146_v0 = vld [vmem:[#allocation2 + $0x310] sm:$0xff]  ;;  %v153_v1 = vld [vmem:[#allocation2 + $0x348] sm:$0xff]  ;;  %vm255_vm0 = vcmask 130048   ;;  %s1170_s12 = sshll.u32 %s1916_s3, 4  ;;  %s1171_s12 = int_to_ptr.hbm [resolvable:$true] %s1170_s12 }
   0xd   :  { %v160_v2 = vld [vmem:[#allocation2 + $0x380] sm:$0xff]  ;;  %v223_v3 = vpack.c.bf16 %v153_v1, %v146_v0  ;;  %v167_v4 = vld [vmem:[#allocation2 + $0x3b8] sm:$0xff]  ;;  %v154_v6 = vld [vmem:[#allocation2 + $0x350] sm:$0xff] }
   0xe   :  { %v147_v5 = vld [vmem:[#allocation2 + $0x318] sm:$0xff]  ;;  %v230_v7 = vpack.c.bf16 %v167_v4, %v160_v2  ;;  %v161_v9 = vld [vmem:[#allocation2 + $0x388] sm:$0xff]  ;;  %v168_v10 = vld [vmem:[#allocation2 + $0x3c0] sm:$0xff] }
   0xf   :  { %v224_v8 = vpack.c.bf16 %v154_v6, %v147_v5  ;;  %v238_v11 = vld [vmem:[#allocation5 + $0x8] sm:$0xff]  ;;  %265 = vmatpush.bf16.msra.mxu0 %v223_v3  ;;  %v231_v12 = vpack.c.bf16 %v168_v10, %v161_v9  ;;  %v240_v13 = vld [vmem:[#allocation5 + $0x18] sm:$0xff]  ;;  %v162_v14 = vld [vmem:[#allocation2 + $0x390] sm:$0xff] }
  0x10   :  { %v169_v15 = vld [vmem:[#allocation2 + $0x3c8] sm:$0xff]  ;;  %296 = vmatpush.bf16.msra.mxu1 %v230_v7  ;;  %v1355_v16 = vpack.c.bf16 %v240_v13, %v238_v11  ;;  %v132_v18 = vld [vmem:[#allocation2 + $0x2a0] sm:$0xff]  ;;  %v139_v19 = vld [vmem:[#allocation2 + $0x2d8] sm:$0xff] }
  0x11   :  { %313 = vmatpush.bf16.msra.mxu2 %v224_v8  ;;  %v232_v17 = vpack.c.bf16 %v169_v15, %v162_v14  ;;  %v133_v20 = vld [vmem:[#allocation2 + $0x2a8] sm:$0xff]  ;;  %344 = vmatpush.bf16.msra.mxu3 %v231_v12  ;;  %v216_v21 = vpack.c.bf16 %v139_v19, %v132_v18  ;;  %v140_v22 = vld [vmem:[#allocation2 + $0x2e0] sm:$0xff]  ;;  %v118_v23 = vld [vmem:[#allocation2 + $0x230] sm:$0xff] }
  0x12   :  { %v125_v24 = vld [vmem:[#allocation2 + $0x268] sm:$0xff]  ;;  %v217_v25 = vpack.c.bf16 %v140_v22, %v133_v20  ;;  %v119_v26 = vld [vmem:[#allocation2 + $0x238] sm:$0xff]  ;;  %v126_v27 = vld [vmem:[#allocation2 + $0x270] sm:$0xff] }
  0x13   :  { %v148_v28 = vld [vmem:[#allocation2 + $0x320] sm:$0xff]  ;;  %1186 = vmatmul.msk.bf16.vlgmr.msra.gmra.mxu1 %vm255_vm0, %v1355_v16  ;;  %266 = vmatpush.bf16.msra.mxu0 %v216_v21  ;;  %v209_v29 = vpack.c.bf16 %v125_v24, %v118_v23  ;;  %v155_v30 = vld [vmem:[#allocation2 + $0x358] sm:$0xff]  ;;  %v210_v31 = vpack.c.bf16 %v126_v27, %v119_v26  ;;  %v134_v35 = vld [vmem:[#allocation2 + $0x2b0] sm:$0xff] }
  0x14   :  { %1189 = vmatmul.msk.bf16.vlgmr.msra.gmra.mxu3 %vm255_vm0, %v1355_v16  ;;  %v225_v32 = vpack.c.bf16 %v155_v30, %v148_v28  ;;  %v104_v33 = vld [vmem:[#allocation2 + $0x1c0] sm:$0xff]  ;;  %v111_v34 = vld [vmem:[#allocation2 + $0x1f8] sm:$0xff]  ;;  %v105_v36 = vld [vmem:[#allocation2 + $0x1c8] sm:$0xff] }
  0x15   :  { %392 = vmatpush.bf16.msrb.mxu3 %v232_v17  ;;  %314 = vmatpush.bf16.msra.mxu2 %v217_v25  ;;  %v112_v37 = vld [vmem:[#allocation2 + $0x200] sm:$0xff]  ;;  %v141_v38 = vld [vmem:[#allocation2 + $0x2e8] sm:$0xff]  ;;  %v202_v40 = vpack.c.bf16 %v111_v34, %v104_v33  ;;  %v90_v42 = vld [vmem:[#allocation2 + $0x150] sm:$0xff] }
  0x16   :  { %361 = vmatpush.bf16.msrb.mxu1 %v225_v32  ;;  %v218_v39 = vpack.c.bf16 %v141_v38, %v134_v35  ;;  %v203_v41 = vpack.c.bf16 %v112_v37, %v105_v36  ;;  %v97_v43 = vld [vmem:[#allocation2 + $0x188] sm:$0xff]  ;;  %v120_v44 = vld [vmem:[#allocation2 + $0x240] sm:$0xff]  ;;  %v91_v45 = vld [vmem:[#allocation2 + $0x158] sm:$0xff] }
  0x17   :  { %267 = vmatpush.bf16.msra.mxu0 %v209_v29  ;;  %v98_v46 = vld [vmem:[#allocation2 + $0x190] sm:$0xff]  ;;  %v127_v47 = vld [vmem:[#allocation2 + $0x278] sm:$0xff]  ;;  %v195_v49 = vpack.c.bf16 %v97_v43, %v90_v42  ;;  %v113_v52 = vld [vmem:[#allocation2 + $0x208] sm:$0xff] }
  0x18   :  { %v211_v48 = vpack.c.bf16 %v127_v47, %v120_v44  ;;  %v242_v50 = vld [vmem:[#allocation5 + $0x28] sm:$0xff]  ;;  %v106_v51 = vld [vmem:[#allocation2 + $0x1d0] sm:$0xff]  ;;  %v196_v53 = vpack.c.bf16 %v98_v46, %v91_v45  ;;  %v244_v54 = vld [vmem:[#allocation5 + $0x38] sm:$0xff] }
  0x19   :  { %315 = vmatpush.bf16.msra.mxu2 %v210_v31  ;;  %v76_v55 = vld [vmem:[#allocation2 + $0xe0] sm:$0xff]  ;;  %v83_v56 = vld [vmem:[#allocation2 + $0x118] sm:$0xff]  ;;  %v77_v57 = vld [vmem:[#allocation2 + $0xe8] sm:$0xff]  ;;  %v204_v59 = vpack.c.bf16 %v113_v52, %v106_v51  ;;  %v1361_v60 = vpack.c.bf16 %v244_v54, %v242_v50 }
  0x1a   :  { %362 = vmatpush.bf16.msrb.mxu1 %v218_v39  ;;  %v84_v58 = vld [vmem:[#allocation2 + $0x120] sm:$0xff]  ;;  %v188_v61 = vpack.c.bf16 %v83_v56, %v76_v55  ;;  %v99_v63 = vld [vmem:[#allocation2 + $0x198] sm:$0xff]  ;;  %v62_v1 = vld [vmem:[#allocation2 + $0x70] sm:$0xff] }
  0x1b   :  { %268 = vmatpush.bf16.msra.mxu0 %v202_v40  ;;  %v92_v62 = vld [vmem:[#allocation2 + $0x160] sm:$0xff]  ;;  %v189_v0 = vpack.c.bf16 %v84_v58, %v77_v57  ;;  %v69_v2 = vld [vmem:[#allocation2 + $0xa8] sm:$0xff]  ;;  %v63_v3 = vld [vmem:[#allocation2 + $0x78] sm:$0xff] }
  0x1c   :  { %v70_v4 = vld [vmem:[#allocation2 + $0xb0] sm:$0xff]  ;;  %v48_v5 = vld [vmem:[#allocation2] sm:$0xff]  ;;  %v197_v6 = vpack.c.bf16 %v99_v63, %v92_v62  ;;  %v181_v7 = vpack.c.bf16 %v69_v2, %v62_v1  ;;  %v55_v8 = vld [vmem:[#allocation2 + $0x38] sm:$0xff] }
  0x1d   :  { %316 = vmatpush.bf16.msra.mxu2 %v203_v41  ;;  %v78_v9 = vld [vmem:[#allocation2 + $0xf0] sm:$0xff]  ;;  %v85_v10 = vld [vmem:[#allocation2 + $0x128] sm:$0xff]  ;;  %v182_v11 = vpack.c.bf16 %v70_v4, %v63_v3  ;;  %v164_v13 = vld [vmem:[#allocation2 + $0x3a0] sm:$0xff]  ;;  %v174_v24 = vpack.c.bf16 %v55_v8, %v48_v5 }
  0x1e   :  { %363 = vmatpush.bf16.msrb.mxu1 %v211_v48  ;;  %v49_v12 = vld [vmem:[#allocation2 + $0x8] sm:$0xff]  ;;  %v171_v14 = vld [vmem:[#allocation2 + $0x3d8] sm:$0xff]  ;;  %v56_v15 = vld [vmem:[#allocation2 + $0x40] sm:$0xff]  ;;  %v190_v21 = vpack.c.bf16 %v85_v10, %v78_v9 }
  0x1f   :  { %269 = vmatpush.bf16.msra.mxu0 %v195_v49  ;;  %v234_v17 = vpack.c.bf16 %v171_v14, %v164_v13  ;;  %v149_v18 = vld [vmem:[#allocation2 + $0x328] sm:$0xff]  ;;  %v156_v19 = vld [vmem:[#allocation2 + $0x360] sm:$0xff]  ;;  %v237_v20 = vld [vmem:[#allocation5] sm:$0xff]  ;;  %v175_v28 = vpack.c.bf16 %v56_v15, %v49_v12 }
  0x20   :  { %v163_v22 = vld [vmem:[#allocation2 + $0x398] sm:$0xff]  ;;  %v170_v23 = vld [vmem:[#allocation2 + $0x3d0] sm:$0xff]  ;;  %v239_v25 = vld [vmem:[#allocation5 + $0x10] sm:$0xff]  ;;  %v226_v29 = vpack.c.bf16 %v156_v19, %v149_v18 }
  0x21   :  { %317 = vmatpush.bf16.msra.mxu2 %v196_v53  ;;  %v64_v26 = vld [vmem:[#allocation2 + $0x80] sm:$0xff]  ;;  %v71_v27 = vld [vmem:[#allocation2 + $0xb8] sm:$0xff]  ;;  %488 = vmatpush.bf16.msra.mxu3 %v234_v17  ;;  %v233_v30 = vpack.c.bf16 %v170_v23, %v163_v22  ;;  %v142_v32 = vld [vmem:[#allocation2 + $0x2f0] sm:$0xff]  ;;  %v1367_v33 = vpack.c.bf16 %v239_v25, %v237_v20 }
  0x22   :  { %364 = vmatpush.bf16.msrb.mxu1 %v204_v59  ;;  %v135_v31 = vld [vmem:[#allocation2 + $0x2b8] sm:$0xff]  ;;  %v183_v34 = vpack.c.bf16 %v71_v27, %v64_v26  ;;  %v50_v35 = vld [vmem:[#allocation2 + $0x10] sm:$0xff]  ;;  %v57_v36 = vld [vmem:[#allocation2 + $0x48] sm:$0xff] }
  0x23   :  { %1187 = vmatmul.msk.bf16.gmra.mxu1 %vm255_vm0, %v1361_v60  ;;  %270 = vmatpush.bf16.msra.mxu0 %v188_v61  ;;  %v246_v37 = vld [vmem:[#allocation5 + $0x48] sm:$0xff]  ;;  %v248_v38 = vld [vmem:[#allocation5 + $0x58] sm:$0xff]  ;;  %v219_v39 = vpack.c.bf16 %v142_v32, %v135_v31  ;;  %v150_v40 = vld [vmem:[#allocation2 + $0x330] sm:$0xff]  ;;  %v176_v42 = vpack.c.bf16 %v57_v36, %v50_v35 }
  0x24   :  { %1190 = vmatmul.msk.bf16.gmra.mxu3 %vm255_vm0, %v1361_v60  ;;  %v157_v41 = vld [vmem:[#allocation2 + $0x368] sm:$0xff]  ;;  %v128_v44 = vld [vmem:[#allocation2 + $0x280] sm:$0xff]  ;;  %v1371_v45 = vpack.c.bf16 %v248_v38, %v246_v37  ;;  %v143_v49 = vld [vmem:[#allocation2 + $0x2f8] sm:$0xff] }
  0x25   :  { %318 = vmatpush.bf16.msra.mxu2 %v189_v0  ;;  %v121_v43 = vld [vmem:[#allocation2 + $0x248] sm:$0xff]  ;;  %v227_v46 = vpack.c.bf16 %v157_v41, %v150_v40  ;;  %v136_v48 = vld [vmem:[#allocation2 + $0x2c0] sm:$0xff]  ;;  %v107_v50 = vld [vmem:[#allocation2 + $0x1d8] sm:$0xff] }
  0x26   :  { %365 = vmatpush.bf16.msrb.mxu1 %v197_v6  ;;  %v212_v47 = vpack.c.bf16 %v128_v44, %v121_v43  ;;  %v114_v51 = vld [vmem:[#allocation2 + $0x210] sm:$0xff]  ;;  %v220_v52 = vpack.c.bf16 %v143_v49, %v136_v48  ;;  %v129_v55 = vld [vmem:[#allocation2 + $0x288] sm:$0xff]  ;;  %v100_v57 = vld [vmem:[#allocation2 + $0x1a0] sm:$0xff] }
  0x27   :  { %271 = vmatpush.bf16.msra.mxu0 %v181_v7  ;;  %v205_v53 = vpack.c.bf16 %v114_v51, %v107_v50  ;;  %v122_v54 = vld [vmem:[#allocation2 + $0x250] sm:$0xff]  ;;  %v93_v56 = vld [vmem:[#allocation2 + $0x168] sm:$0xff]  ;;  %v243_v59 = vld [vmem:[#allocation5 + $0x30] sm:$0xff] }
  0x28   :  { %v241_v58 = vld [vmem:[#allocation5 + $0x20] sm:$0xff]  ;;  %v213_v61 = vpack.c.bf16 %v129_v55, %v122_v54  ;;  %v198_v62 = vpack.c.bf16 %v100_v57, %v93_v56  ;;  %v108_v63 = vld [vmem:[#allocation2 + $0x1e0] sm:$0xff]  ;;  %v115_v0 = vld [vmem:[#allocation2 + $0x218] sm:$0xff] }
  0x29   :  { %319 = vmatpush.bf16.msra.mxu2 %v182_v11  ;;  %v1377_v1 = vpack.c.bf16 %v243_v59, %v241_v58  ;;  %v79_v2 = vld [vmem:[#allocation2 + $0xf8] sm:$0xff]  ;;  %v86_v3 = vld [vmem:[#allocation2 + $0x130] sm:$0xff]  ;;  %v206_v4 = vpack.c.bf16 %v115_v0, %v108_v63  ;;  %v65_v6 = vld [vmem:[#allocation2 + $0x88] sm:$0xff] }
  0x2a   :  { %366 = vmatpush.bf16.msrb.mxu1 %v190_v21  ;;  %v191_v5 = vpack.c.bf16 %v86_v3, %v79_v2  ;;  %v72_v7 = vld [vmem:[#allocation2 + $0xc0] sm:$0xff]  ;;  %v94_v8 = vld [vmem:[#allocation2 + $0x170] sm:$0xff]  ;;  %v101_v9 = vld [vmem:[#allocation2 + $0x1a8] sm:$0xff] }
  0x2b   :  { %272 = vmatpush.bf16.msra.mxu0 %v174_v24  ;;  %v199_v10 = vpack.c.bf16 %v101_v9, %v94_v8  ;;  %v184_v11 = vpack.c.bf16 %v72_v7, %v65_v6  ;;  %v51_v12 = vld [vmem:[#allocation2 + $0x18] sm:$0xff]  ;;  %v58_v13 = vld [vmem:[#allocation2 + $0x50] sm:$0xff]  ;;  %v80_v14 = vld [vmem:[#allocation2 + $0x100] sm:$0xff] }
  0x2c   :  { %v87_v15 = vld [vmem:[#allocation2 + $0x138] sm:$0xff]  ;;  %v177_v17 = vpack.c.bf16 %v58_v13, %v51_v12  ;;  %v66_v19 = vld [vmem:[#allocation2 + $0x90] sm:$0xff]  ;;  %v73_v20 = vld [vmem:[#allocation2 + $0xc8] sm:$0xff] }
  0x2d   :  { %320 = vmatpush.bf16.msra.mxu2 %v175_v28  ;;  %v192_v18 = vpack.c.bf16 %v87_v15, %v80_v14  ;;  %v245_v21 = vld [vmem:[#allocation5 + $0x40] sm:$0xff]  ;;  %v247_v22 = vld [vmem:[#allocation5 + $0x50] sm:$0xff]  ;;  %v185_v23 = vpack.c.bf16 %v73_v20, %v66_v19  ;;  %v59_v26 = vld [vmem:[#allocation2 + $0x58] sm:$0xff] }
  0x2e   :  { %273 = vmatmul.bf16.vlgmr.msra.gmra.mxu0 %v1367_v33  ;;  %367 = vmatpush.bf16.msrb.mxu1 %v183_v34  ;;  %v1384_v24 = vpack.c.bf16 %v247_v22, %v245_v21  ;;  %v52_v25 = vld [vmem:[#allocation2 + $0x20] sm:$0xff]  ;;  %v165_v28 = vld [vmem:[#allocation2 + $0x3a8] sm:$0xff]  ;;  %v166_v31 = vld [vmem:[#allocation2 + $0x3b0] sm:$0xff] }
  0x2f   :  { %409 = vmatpush.bf16.msrb.mxu0 %v226_v29  ;;  %v178_v27 = vpack.c.bf16 %v59_v26, %v52_v25  ;;  %v172_v29 = vld [vmem:[#allocation2 + $0x3e0] sm:$0xff]  ;;  %v173_v32 = vld [vmem:[#allocation2 + $0x3e8] sm:$0xff]  ;;  %v151_v34 = vld [vmem:[#allocation2 + $0x338] sm:$0xff] }
  0x30   :  { %321 = vmatmul.bf16.vlgmr.msra.gmra.mxu2 %v1367_v33  ;;  %v236_v35 = vpack.c.bf16 %v173_v32, %v166_v31  ;;  %v158_v36 = vld [vmem:[#allocation2 + $0x370] sm:$0xff]  ;;  %v152_v37 = vld [vmem:[#allocation2 + $0x340] sm:$0xff]  ;;  %v159_v38 = vld [vmem:[#allocation2 + $0x378] sm:$0xff] }
  0x31   :  { %440 = vmatpush.bf16.msrb.mxu2 %v233_v30  ;;  %v235_v30 = vpack.c.bf16 %v172_v29, %v165_v28  ;;  %v229_v40 = vpack.c.bf16 %v159_v38, %v152_v37  ;;  %v137_v41 = vld [vmem:[#allocation2 + $0x2c8] sm:$0xff]  ;;  %v123_v44 = vld [vmem:[#allocation2 + $0x258] sm:$0xff]  ;;  %v138_v48 = vld [vmem:[#allocation2 + $0x2d0] sm:$0xff] }
  0x32   :  { %368 = vmatpush.bf16.msrb.mxu1 %v176_v42  ;;  %v144_v42 = vld [vmem:[#allocation2 + $0x300] sm:$0xff]  ;;  %v145_v49 = vld [vmem:[#allocation2 + $0x308] sm:$0xff]  ;;  %v131_v55 = vld [vmem:[#allocation2 + $0x298] sm:$0xff] }
  0x33   :  { %410 = vmatpush.bf16.msrb.mxu0 %v219_v39  ;;  %1188 = vmatmul.msk.bf16.gmra.mxu1 %vm255_vm0, %v1371_v45  ;;  %v228_v39 = vpack.c.bf16 %v158_v36, %v151_v34  ;;  %v221_v43 = vpack.c.bf16 %v144_v42, %v137_v41  ;;  %v109_v50 = vld [vmem:[#allocation2 + $0x1e8] sm:$0xff]  ;;  %v222_v51 = vpack.c.bf16 %v145_v49, %v138_v48  ;;  %v124_v54 = vld [vmem:[#allocation2 + $0x260] sm:$0xff]  ;;  %v95_v56 = vld [vmem:[#allocation2 + $0x178] sm:$0xff] }
  0x34   :  { %1191 = vmatmul.msk.bf16.gmra.mxu3 %vm255_vm0, %v1371_v45  ;;  %v215_v57 = vpack.c.bf16 %v131_v55, %v124_v54  ;;  %v102_v58 = vld [vmem:[#allocation2 + $0x1b0] sm:$0xff]  ;;  %v81_v59 = vld [vmem:[#allocation2 + $0x108] sm:$0xff]  ;;  %v96_v7 = vld [vmem:[#allocation2 + $0x180] sm:$0xff] }
  0x35   :  { %536 = vmatpush.bf16.msra.mxu2 %v235_v30  ;;  %v110_v63 = vld [vmem:[#allocation2 + $0x1f0] sm:$0xff]  ;;  %v117_v0 = vld [vmem:[#allocation2 + $0x228] sm:$0xff]  ;;  %v103_v8 = vld [vmem:[#allocation2 + $0x1b8] sm:$0xff] }
  0x36   :  { %457 = vmatpush.bf16.msra.mxu1 %v227_v46  ;;  %v130_v46 = vld [vmem:[#allocation2 + $0x290] sm:$0xff]  ;;  %v208_v2 = vpack.c.bf16 %v117_v0, %v110_v63  ;;  %v53_v9 = vld [vmem:[#allocation2 + $0x28] sm:$0xff] }
  0x37   :  { %411 = vmatpush.bf16.msrb.mxu0 %v212_v47  ;;  %v214_v47 = vpack.c.bf16 %v130_v46, %v123_v44  ;;  %v82_v13 = vld [vmem:[#allocation2 + $0x110] sm:$0xff]  ;;  %v89_v14 = vld [vmem:[#allocation2 + $0x148] sm:$0xff] }
  0x38   :  { %v194_v15 = vpack.c.bf16 %v89_v14, %v82_v13  ;;  %v54_v20 = vld [vmem:[#allocation2 + $0x30] sm:$0xff]  ;;  %v61_v21 = vld [vmem:[#allocation2 + $0x68] sm:$0xff] }
  0x39   :  { %v180_v22 = vpack.c.bf16 %v61_v21, %v54_v20 }
  0x3a   :  { %458 = vmatpush.bf16.msra.mxu1 %v220_v52  ;;  %v116_v52 = vld [vmem:[#allocation2 + $0x220] sm:$0xff] }
  0x3b   :  { %412 = vmatpush.bf16.msrb.mxu0 %v205_v53  ;;  %v207_v53 = vpack.c.bf16 %v116_v52, %v109_v50 }
  0x3e   :  { %459 = vmatpush.bf16.msra.mxu1 %v213_v61  ;;  %278 = vmatmul.bf16.gmra.mxu0 %v1377_v1  ;;  %v88_v61 = vld [vmem:[#allocation2 + $0x140] sm:$0xff] }
  0x3f   :  { %413 = vmatpush.bf16.msrb.mxu0 %v198_v62  ;;  %v200_v62 = vpack.c.bf16 %v102_v58, %v95_v56  ;;  %v193_v3 = vpack.c.bf16 %v88_v61, %v81_v59 }
  0x40   :  { %326 = vmatmul.bf16.gmra.mxu2 %v1377_v1 }
  0x42   :  { %460 = vmatpush.bf16.msra.mxu1 %v206_v4  ;;  %v67_v4 = vld [vmem:[#allocation2 + $0x98] sm:$0xff] }
  0x43   :  { %414 = vmatpush.bf16.msrb.mxu0 %v191_v5  ;;  %369 = vmatmul.bf16.vlgmr.msrb.gmra.mxu1 %v1367_v33  ;;  %v74_v5 = vld [vmem:[#allocation2 + $0xd0] sm:$0xff] }
  0x44   :  { %1192 = vmatmul.msk.bf16.vlgmr.msrb.gmra.mxu3 %vm255_vm0, %v1355_v16  ;;  %v186_v6 = vpack.c.bf16 %v74_v5, %v67_v4 }
  0x45   :  { %584 = vmatpush.bf16.msrb.mxu3 %v236_v35 }
  0x46   :  { %461 = vmatpush.bf16.msra.mxu1 %v199_v10  ;;  %v201_v10 = vpack.c.bf16 %v103_v8, %v96_v7 }
  0x47   :  { %415 = vmatpush.bf16.msrb.mxu0 %v184_v11  ;;  %v60_v11 = vld [vmem:[#allocation2 + $0x60] sm:$0xff] }
  0x48   :  { %v179_v12 = vpack.c.bf16 %v60_v11, %v53_v9 }
  0x4a   :  { %462 = vmatpush.bf16.msra.mxu1 %v192_v18  ;;  %v75_v18 = vld [vmem:[#allocation2 + $0xd8] sm:$0xff] }
  0x4b   :  { %416 = vmatpush.bf16.msrb.mxu0 %v177_v17  ;;  %v68_v17 = vld [vmem:[#allocation2 + $0xa0] sm:$0xff] }
  0x4c   :  { %v187_v19 = vpack.c.bf16 %v75_v18, %v68_v17 }
  0x4e   :  { %463 = vmatpush.bf16.msra.mxu1 %v185_v23  ;;  %283 = vmatmul.bf16.gmra.mxu0 %v1384_v24 }
  0x4f   :  { %505 = vmatpush.bf16.msra.mxu0 %v228_v39 }
  0x50   :  { %331 = vmatmul.bf16.gmra.mxu2 %v1384_v24 }
  0x52   :  { %464 = vmatpush.bf16.msra.mxu1 %v178_v27 }
  0x53   :  { %374 = vmatmul.bf16.gmra.mxu1 %v1377_v1  ;;  %506 = vmatpush.bf16.msra.mxu0 %v221_v43 }
  0x54   :  { %1193 = vmatmul.msk.bf16.gmra.mxu3 %vm255_vm0, %v1361_v60 }
  0x56   :  { %553 = vmatpush.bf16.msrb.mxu1 %v229_v40 }
  0x57   :  { %507 = vmatpush.bf16.msra.mxu0 %v214_v47 }
  0x5a   :  { %554 = vmatpush.bf16.msrb.mxu1 %v222_v51 }
  0x5b   :  { %508 = vmatpush.bf16.msra.mxu0 %v207_v53 }
  0x5e   :  { %417 = vmatmul.bf16.vlgmr.msrb.gmra.mxu0 %v1367_v33  ;;  %555 = vmatpush.bf16.msrb.mxu1 %v215_v57 }
  0x5f   :  { %509 = vmatpush.bf16.msra.mxu0 %v200_v62 }
  0x60   :  { %1195 = vmatmul.msk.bf16.vlgmr.msrb.gmra.mxu2 %vm255_vm0, %v1355_v16 }
  0x62   :  { %556 = vmatpush.bf16.msrb.mxu1 %v208_v2 }
  0x63   :  { %379 = vmatmul.bf16.gmra.mxu1 %v1384_v24  ;;  %510 = vmatpush.bf16.msra.mxu0 %v193_v3 }
  0x64   :  { %1194 = vmatmul.msk.bf16.gmra.mxu3 %vm255_vm0, %v1371_v45 }
  0x66   :  { %557 = vmatpush.bf16.msrb.mxu1 %v201_v10 }
  0x67   :  { %511 = vmatpush.bf16.msra.mxu0 %v186_v6 }
  0x6a   :  { %558 = vmatpush.bf16.msrb.mxu1 %v194_v15 }
  0x6b   :  { %512 = vmatpush.bf16.msra.mxu0 %v179_v12 }
  0x6e   :  { %422 = vmatmul.bf16.gmra.mxu0 %v1377_v1  ;;  %559 = vmatpush.bf16.msrb.mxu1 %v187_v19 }
  0x70   :  { %1196 = vmatmul.msk.bf16.gmra.mxu2 %vm255_vm0, %v1361_v60 }
  0x72   :  { %560 = vmatpush.bf16.msrb.mxu1 %v180_v22 }
  0x73   :  { %465 = vmatmul.bf16.vlgmr.msra.gmra.mxu1 %v1367_v33 }
  0x74   :  { %1198 = vmatmul.msk.bf16.vlgmr.msra.gmra.mxu3 %vm255_vm0, %v1355_v16 }
  0x7e   :  { %427 = vmatmul.bf16.gmra.mxu0 %v1384_v24 }
  0x80   :  { %1197 = vmatmul.msk.bf16.gmra.mxu2 %vm255_vm0, %v1371_v45 }
  0x83   :  { %470 = vmatmul.bf16.gmra.mxu1 %v1377_v1 }
  0x84   :  { %1199 = vmatmul.msk.bf16.gmra.mxu3 %vm255_vm0, %v1361_v60 }
  0x8e   :  { %513 = vmatmul.bf16.vlgmr.msra.gmra.mxu0 %v1367_v33 }
  0x90   :  { %1201 = vmatmul.msk.bf16.vlgmr.msra.gmra.mxu2 %vm255_vm0, %v1355_v16  ;;  %v298_v23 = vpop.f32.mrf.mxu1 }
  0x93   :  { %475 = vmatmul.bf16.gmra.mxu1 %v1384_v24 }
  0x94   :  { %1200 = vmatmul.msk.bf16.gmra.mxu3 %vm255_vm0, %v1371_v45 }
  0x97   :  { %v346_v25 = vpop.f32.mrf.mxu3 }
  0x98   :  { %v300_v26 = vpop.f32.mrf.mxu1 }
  0x9e   :  { %518 = vmatmul.bf16.gmra.mxu0 %v1377_v1 }
  0x9f   :  { %v348_v27 = vpop.f32.mrf.mxu3 }
  0xa0   :  { %1202 = vmatmul.msk.bf16.gmra.mxu2 %vm255_vm0, %v1361_v60  ;;  %v303_v28 = vpop.f32.mrf.mxu1 }
  0xa3   :  { %561 = vmatmul.bf16.vlgmr.msrb.gmra.mxu1 %v1367_v33 }
  0xa4   :  { %1204 = vmatmul.msk.bf16.vlgmr.msrb.gmra.mxu3 %vm255_vm0, %v1355_v16 }
  0xa7   :  { %v351_v29 = vpop.f32.mrf.mxu3 }
  0xa8   :  { %v305_v30 = vpop.f32.mrf.mxu1 }
  0xab   :  { %v274_v31 = vpop.f32.mrf.mxu0 }
  0xac   :  { %v1421_v32 = vadd.f32 %v298_v23, %v274_v31 }
  0xae   :  { %523 = vmatmul.bf16.gmra.mxu0 %v1384_v24 }
  0xaf   :  { %v353_v34 = vpop.f32.mrf.mxu3 }
  0xb0   :  { %1203 = vmatmul.msk.bf16.gmra.mxu2 %vm255_vm0, %v1371_v45  ;;  %v308_v35 = vpop.f32.mrf.mxu1 }
  0xb3   :  { %v322_v36 = vpop.f32.mrf.mxu2  ;;  %566 = vmatmul.bf16.gmra.mxu1 %v1377_v1  ;;  %v276_v33 = vpop.f32.mrf.mxu0 }
  0xb4   :  { %v1426_v37 = vadd.f32 %v346_v25, %v322_v36  ;;  %1205 = vmatmul.msk.bf16.gmra.mxu3 %vm255_vm0, %v1361_v60  ;;  %v1431_v16 = vadd.f32 %v300_v26, %v276_v33 }
  0xb7   :  { %v356_v38 = vpop.f32.mrf.mxu3 }
  0xb8   :  { %v310_v39 = vpop.f32.mrf.mxu1 }
  0xbb   :  { %v324_v40 = vpop.f32.mrf.mxu2  ;;  %v279_v42 = vpop.f32.mrf.mxu0 }
  0xbc   :  { %v1433_v41 = vadd.f32 %v348_v27, %v324_v40  ;;  %v1435_v43 = vadd.f32 %v303_v28, %v279_v42 }
  0xbf   :  { %v358_v44 = vpop.f32.mrf.mxu3 }
  0xc0   :  { %v370_v46 = vpop.f32.mrf.mxu1 }
  0xc3   :  { %v327_v47 = vpop.f32.mrf.mxu2  ;;  %571 = vmatmul.bf16.gmra.mxu1 %v1384_v24  ;;  %v281_v1 = vpop.f32.mrf.mxu0 }
  0xc4   :  { %v1437_v48 = vadd.f32 %v351_v29, %v327_v47  ;;  %1206 = vmatmul.msk.bf16.gmra.mxu3 %vm255_vm0, %v1371_v45  ;;  %v1442_v60 = vadd.f32 %v305_v30, %v281_v1 }
  0xc7   :  { %v394_v49 = vpop.f32.mrf.mxu3 }
  0xc8   :  { %v1444_v50 = vadd.f32 %v394_v49, %v370_v46  ;;  %v372_v51 = vpop.f32.mrf.mxu1 }
  0xcb   :  { %v329_v52 = vpop.f32.mrf.mxu2  ;;  %v284_v54 = vpop.f32.mrf.mxu0 }
  0xcc   :  { %v1446_v53 = vadd.f32 %v353_v34, %v329_v52  ;;  %v1448_v55 = vadd.f32 %v308_v35, %v284_v54 }
  0xcf   :  { %v396_v56 = vpop.f32.mrf.mxu3 }
  0xd0   :  { %v1450_v57 = vadd.f32 %v396_v56, %v372_v51  ;;  %v375_v24 = vpop.f32.mrf.mxu1  ;;  %v662_v51 = vadd.f32 %v1426_v37, %v1421_v32 }
  0xd3   :  { %v332_v58 = vpop.f32.mrf.mxu2  ;;  %v286_v45 = vpop.f32.mrf.mxu0 }
  0xd4   :  { %v1452_v59 = vadd.f32 %v356_v38, %v332_v58  ;;  %v1454_v61 = vadd.f32 %v310_v39, %v286_v45 }
  0xd7   :  { %v399_v62 = vpop.f32.mrf.mxu3 }
  0xd8   :  { %v1456_v63 = vadd.f32 %v399_v62, %v375_v24  ;;  %v377_v0 = vpop.f32.mrf.mxu1  ;;  %v663_v24 = vadd.f32 %v662_v51, %v1444_v50 }
  0xdb   :  { %v334_v2 = vpop.f32.mrf.mxu2  ;;  %v418_v7 = vpop.f32.mrf.mxu0 }
  0xdc   :  { %v1458_v3 = vadd.f32 %v358_v44, %v334_v2 }
  0xdf   :  { %v401_v4 = vpop.f32.mrf.mxu3 }
  0xe0   :  { %v1460_v5 = vadd.f32 %v401_v4, %v377_v0  ;;  %v380_v6 = vpop.f32.mrf.mxu1 }
  0xe3   :  { %v442_v8 = vpop.f32.mrf.mxu2  ;;  %v420_v12 = vpop.f32.mrf.mxu0 }
  0xe4   :  { %v1490_v49 = vadd.f32 %v442_v8, %v418_v7 }
  0xe6   :  { %v664_v45 = vadd.f32 %v663_v24, %v1490_v49 }
  0xe7   :  { %v404_v9 = vpop.f32.mrf.mxu3 }
  0xe8   :  { %v1462_v10 = vadd.f32 %v404_v9, %v380_v6  ;;  %v382_v11 = vpop.f32.mrf.mxu1  ;;  %v671_v9 = vadd.f32 %v1433_v41, %v1431_v16 }
  0xeb   :  { %v444_v13 = vpop.f32.mrf.mxu2  ;;  %v423_v18 = vpop.f32.mrf.mxu0 }
  0xec   :  { %v1502_v4 = vadd.f32 %v444_v13, %v420_v12 }
  0xef   :  { %v406_v14 = vpop.f32.mrf.mxu3 }
  0xf0   :  { %v1464_v15 = vadd.f32 %v406_v14, %v382_v11  ;;  %v466_v17 = vpop.f32.mrf.mxu1 }
  0xf3   :  { %v447_v20 = vpop.f32.mrf.mxu2  ;;  %v1466_v25 = vpop.f32.mrf.mxu0 }
  0xf7   :  { %v490_v19 = vpop.f32.mrf.mxu3 }
  0xf8   :  { %v468_v21 = vpop.f32.mrf.mxu1  ;;  %v1495_v56 = vadd.f32 %v490_v19, %v466_v17  ;;  %v672_v19 = vadd.f32 %v671_v9, %v1450_v57 }
  0xfa   :  { %v665_v0 = vadd.f32 %v664_v45, %v1495_v56 }
  0xfb   :  { %v1468_v26 = vpop.f32.mrf.mxu2  ;;  %v1472_v29 = vpop.f32.mrf.mxu0 }
  0xff   :  { %v492_v22 = vpop.f32.mrf.mxu3 }
 0x100   :  { %v471_v23 = vpop.f32.mrf.mxu1  ;;  %v1512_v14 = vadd.f32 %v492_v22, %v468_v21  ;;  %v836_v22 = vadd.f32 %v1437_v48, %v1435_v43 }
 0x103   :  { %v1474_v30 = vpop.f32.mrf.mxu2  ;;  %v1480_v35 = vpop.f32.mrf.mxu0 }
 0x107   :  { %v495_v27 = vpop.f32.mrf.mxu3 }
 0x108   :  { %v1470_v28 = vpop.f32.mrf.mxu1 }
 0x10b   :  { %v1482_v36 = vpop.f32.mrf.mxu2  ;;  %v514_v39 = vpop.f32.mrf.mxu0 }
 0x10f   :  { %v1476_v31 = vpop.f32.mrf.mxu3 }
 0x110   :  { %v1478_v34 = vpop.f32.mrf.mxu1 }
 0x113   :  { %v538_v42 = vpop.f32.mrf.mxu2  ;;  %v516_v52 = vpop.f32.mrf.mxu0 }
 0x114   :  { %v1498_v58 = vadd.f32 %v538_v42, %v514_v39  ;;  %v673_v42 = vadd.f32 %v672_v19, %v1502_v4 }
 0x116   :  { %v666_v8 = vadd.f32 %v665_v0, %v1498_v58 }
 0x117   :  { %v1484_v33 = vpop.f32.mrf.mxu3 }
 0x118   :  { %v1486_v38 = vpop.f32.mrf.mxu1 }
 0x11b   :  { %v540_v54 = vpop.f32.mrf.mxu2  ;;  %v519_v12 = vpop.f32.mrf.mxu0 }
 0x11c   :  { %v1515_v39 = vadd.f32 %v540_v54, %v516_v52  ;;  %v1529_v54 = vadd.f32 %v495_v27, %v471_v23 }
 0x11f   :  { %v1488_v40 = vpop.f32.mrf.mxu3 }
 0x120   :  { %v562_v44 = vpop.f32.mrf.mxu1 }
 0x123   :  { %v543_v13 = vpop.f32.mrf.mxu2  ;;  %v521_v0 = vpop.f32.mrf.mxu0 }
 0x127   :  { %v586_v46 = vpop.f32.mrf.mxu3 }
 0x128   :  { %v587_v47 = vadd.f32 %v586_v46, %v562_v44  ;;  %v564_v1 = vpop.f32.mrf.mxu1  ;;  %v674_v46 = vadd.f32 %v673_v42, %v1512_v14 }
 0x12a   :  { %607 = vst.msk [vmem:[#allocation7 + $0x30] sm:$0xff] %vm255_vm0, %v587_v47  ;;  %v675_v21 = vadd.f32 %v674_v46, %v1515_v39 }
 0x12f   :  { %v588_v62 = vpop.f32.mrf.mxu3 }
 0x130   :  { %v589_v2 = vadd.f32 %v588_v62, %v564_v1  ;;  %v567_v6 = vpop.f32.mrf.mxu1  ;;  %v1519_v1 = vadd.f32 %v447_v20, %v423_v18  ;;  %v837_v62 = vadd.f32 %v836_v22, %v1456_v63  ;;  %v1532_v18 = vadd.f32 %v543_v13, %v519_v12 }
 0x131   :  { %v1504_v7 = vld [vmem:[#allocation7 + $0x30] sm:$0xff]  ;;  %v1550_v12 = vadd.f32 %v1476_v31, %v1470_v28 }
 0x132   :  { %614 = vst.msk [vmem:[#allocation7 + $0x68] sm:$0xff] %vm255_vm0, %v589_v2  ;;  %v667_v11 = vsel %vm255_vm0, %v1504_v7, 0.0  ;;  %v838_v20 = vadd.f32 %v837_v62, %v1519_v1  ;;  %v545_v2 = vpop.f32.mrf.mxu2 }
 0x133   :  { %v668_v17 = vadd.f32 %v667_v11, %v666_v8  ;;  %v1538_v11 = vadd.f32 %v1468_v26, %v1466_v25  ;;  %v1553_v26 = vadd.f32 %v545_v2, %v521_v0 }
 0x134   :  { %v839_v8 = vadd.f32 %v838_v20, %v1529_v54  ;;  %v1571_v20 = vadd.f32 %v1484_v33, %v1478_v34  ;;  %v1019_v33 = vadd.f32 %v1458_v3, %v1454_v61 }
 0x135   :  { %669 = vadd.xlane.f32.xlu0 %v668_v17  ;;  %v845_v17 = vadd.f32 %v1446_v53, %v1442_v60 }
 0x136   :  { %v840_v27 = vadd.f32 %v839_v8, %v1532_v18 }
 0x137   :  { %v591_v44 = vpop.f32.mrf.mxu3  ;;  %v846_v25 = vadd.f32 %v845_v17, %v1460_v5  ;;  %v1580_v17 = vadd.f32 %v1482_v36, %v1480_v35  ;;  %v1020_v36 = vadd.f32 %v1019_v33, %v1464_v15 }
 0x138   :  { %v592_v47 = vadd.f32 %v591_v44, %v567_v6  ;;  %v569_v24 = vpop.f32.mrf.mxu1 }
 0x139   :  { %v1521_v51 = vld [vmem:[#allocation7 + $0x68] sm:$0xff]  ;;  %v847_v44 = vadd.f32 %v846_v25, %v1538_v11 }
 0x13a   :  { %621 = vst.msk [vmem:[#allocation7 + $0xa0] sm:$0xff] %vm255_vm0, %v592_v47  ;;  %v676_v52 = vsel %vm255_vm0, %v1521_v51, 0.0  ;;  %v548_v22 = vpop.f32.mrf.mxu2 }
 0x13b   :  { %v677_v45 = vadd.f32 %v676_v52, %v675_v21  ;;  %v848_v47 = vadd.f32 %v847_v44, %v1550_v12  ;;  %v524_v21 = vpop.f32.mrf.mxu0  ;;  %v1592_v44 = vadd.f32 %v1488_v40, %v1486_v38 }
 0x13d   :  { %678 = vadd.xlane.f32.xlu0 %v677_v45  ;;  %v849_v31 = vadd.f32 %v848_v47, %v1553_v26  ;;  %v1010_v45 = vadd.f32 %v1452_v59, %v1448_v55  ;;  %v1021_v47 = vadd.f32 %v1020_v36, %v1580_v17 }
 0x13f   :  { %v593_v6 = vpop.f32.mrf.mxu3 }
 0x140   :  { %v594_v9 = vadd.f32 %v593_v6, %v569_v24  ;;  %v572_v42 = vpop.f32.mrf.mxu1  ;;  %v1559_v24 = vadd.f32 %v1474_v30, %v1472_v29  ;;  %v1011_v29 = vadd.f32 %v1010_v45, %v1462_v10  ;;  %v1574_v30 = vadd.f32 %v548_v22, %v524_v21 }
 0x141   :  { %v1540_v23 = vld [vmem:[#allocation7 + $0xa0] sm:$0xff]  ;;  %v1022_v21 = vadd.f32 %v1021_v47, %v1592_v44 }
 0x142   :  { %628 = vst.msk [vmem:[#allocation7 + $0xd8] sm:$0xff] %vm255_vm0, %v594_v9  ;;  %v841_v19 = vsel %vm255_vm0, %v1540_v23, 0.0  ;;  %v1012_v2 = vadd.f32 %v1011_v29, %v1559_v24  ;;  %v550_v25 = vpop.f32.mrf.mxu2 }
 0x143   :  { %v842_v13 = vadd.f32 %v841_v19, %v840_v27 }
 0x144   :  { %v1013_v9 = vadd.f32 %v1012_v2, %v1571_v20 }
 0x145   :  { %843 = vadd.xlane.f32.xlu1 %v842_v13  ;;  %v526_v13 = vpop.f32.mrf.mxu0 }
 0x146   :  { %v1014_v34 = vadd.f32 %v1013_v9, %v1574_v30 }
 0x147   :  { %v596_v46 = vpop.f32.mrf.mxu3 }
 0x148   :  { %v597_v52 = vadd.f32 %v596_v46, %v572_v42  ;;  %v574_v6 = vpop.f32.mrf.mxu1  ;;  %v1595_v46 = vadd.f32 %v550_v25, %v526_v13 }
 0x149   :  { %v1561_v28 = vld [vmem:[#allocation7 + $0xd8] sm:$0xff] }
 0x14a   :  { %635 = vst.msk [vmem:[#allocation7 + $0x110] sm:$0xff] %vm255_vm0, %v597_v52  ;;  %v850_v62 = vsel %vm255_vm0, %v1561_v28, 0.0  ;;  %v1023_v52 = vadd.f32 %v1022_v21, %v1595_v46 }
 0x14b   :  { %v851_v0 = vadd.f32 %v850_v62, %v849_v31 }
 0x14d   :  { %852 = vadd.xlane.f32.xlu1 %v851_v0 }
 0x14f   :  { %v598_v8 = vpop.f32.mrf.mxu3 }
 0x150   :  { %v599_v27 = vadd.f32 %v598_v8, %v574_v6 }
 0x151   :  { %v1582_v19 = vld [vmem:[#allocation7 + $0x110] sm:$0xff] }
 0x152   :  { %642 = vst.msk [vmem:[#allocation7 + $0x148] sm:$0xff] %vm255_vm0, %v599_v27  ;;  %v1015_v42 = vsel %vm255_vm0, %v1582_v19, 0.0 }
 0x153   :  { %v1016_v35 = vadd.f32 %v1015_v42, %v1014_v34 }
 0x155   :  { %1017 = vadd.xlane.f32.xlu2 %v1016_v35 }
 0x159   :  { %v1599_v22 = vld [vmem:[#allocation7 + $0x148] sm:$0xff] }
 0x15a   :  { %v1024_v31 = vsel %vm255_vm0, %v1599_v22, 0.0 }
 0x15b   :  { %v1025_v45 = vadd.f32 %v1024_v31, %v1023_v52 }
 0x15d   :  { %1026 = vadd.xlane.f32.xlu2 %v1025_v45 }
 0x1a8   :  { %v670_v38 = vpop.xlane.xlu0 %669 }
 0x1a9   :  { %v680_v40 = vmul.f32 0.0012755102, %v670_v38 }
 0x1ab   :  { %v1605_v62 = vsub.f32 %v1421_v32, %v680_v40  ;;  %v1608_v0 = vsub.f32 %v1426_v37, %v680_v40  ;;  %v1611_v29 = vsub.f32 %v1444_v50, %v680_v40  ;;  %v1614_v2 = vsub.f32 %v1490_v49, %v680_v40 }
 0x1ac   :  { %v1621_v9 = vsub.f32 %v1495_v56, %v680_v40  ;;  %v1626_v50 = vsub.f32 %v1498_v58, %v680_v40  ;;  %v1629_v49 = vsub.f32 %v1504_v7, %v680_v40 }
 0x1ad   :  { %v696_v6 = vmul.f32 %v1605_v62, %v1605_v62  ;;  %v697_v8 = vmul.f32 %v1608_v0, %v1608_v0  ;;  %v698_v32 = vmul.f32 %v1611_v29, %v1611_v29  ;;  %v699_v33 = vmul.f32 %v1614_v2, %v1614_v2 }
 0x1ae   :  { %v700_v56 = vmul.f32 %v1621_v9, %v1621_v9  ;;  %v701_v7 = vmul.f32 %v1626_v50, %v1626_v50  ;;  %v702_v36 = vmul.f32 %v1629_v49, %v1629_v49 }
 0x1af   :  { %v710_v37 = vadd.f32 %v697_v8, %v696_v6 }
 0x1b0   :  { %v679_v27 = vpop.xlane.xlu0 %678  ;;  %v715_v40 = vsel %vm255_vm0, %v702_v36, 0.0 }
 0x1b1   :  { %v681_v34 = vmul.f32 0.0012755102, %v679_v27  ;;  %v711_v13 = vadd.f32 %v710_v37, %v698_v32 }
 0x1b3   :  { %v712_v25 = vadd.f32 %v711_v13, %v699_v33  ;;  %v1636_v42 = vsub.f32 %v1431_v16, %v681_v34  ;;  %v1639_v35 = vsub.f32 %v1433_v41, %v681_v34  ;;  %v1642_v58 = vsub.f32 %v1450_v57, %v681_v34 }
 0x1b4   :  { %v1649_v21 = vsub.f32 %v1502_v4, %v681_v34  ;;  %v1656_v52 = vsub.f32 %v1512_v14, %v681_v34  ;;  %v1662_v4 = vsub.f32 %v1515_v39, %v681_v34  ;;  %v1665_v6 = vsub.f32 %v1521_v51, %v681_v34 }
 0x1b5   :  { %v713_v47 = vadd.f32 %v712_v25, %v700_v56  ;;  %v703_v16 = vmul.f32 %v1636_v42, %v1636_v42  ;;  %v704_v41 = vmul.f32 %v1639_v35, %v1639_v35  ;;  %v705_v31 = vmul.f32 %v1642_v58, %v1642_v58 }
 0x1b6   :  { %v706_v14 = vmul.f32 %v1649_v21, %v1649_v21  ;;  %v707_v27 = vmul.f32 %v1656_v52, %v1656_v52  ;;  %v708_v34 = vmul.f32 %v1662_v4, %v1662_v4  ;;  %v709_v56 = vmul.f32 %v1665_v6, %v1665_v6 }
 0x1b7   :  { %v714_v57 = vadd.f32 %v713_v47, %v701_v7  ;;  %v719_v45 = vadd.f32 %v704_v41, %v703_v16 }
 0x1b8   :  { %v844_v38 = vpop.xlane.xlu1 %843 }
 0x1b9   :  { %v854_v8 = vmul.f32 0.0012755102, %v844_v38  ;;  %v716_v32 = vadd.f32 %v715_v40, %v714_v57  ;;  %v720_v37 = vadd.f32 %v719_v45, %v705_v31  ;;  %v724_v57 = vsel %vm255_vm0, %v709_v56, 0.0 }
 0x1bb   :  { %717 = vadd.xlane.f32.xlu0 %v716_v32  ;;  %v721_v33 = vadd.f32 %v720_v37, %v706_v14  ;;  %v1672_v13 = vsub.f32 %v1435_v43, %v854_v8  ;;  %v1675_v39 = vsub.f32 %v1437_v48, %v854_v8  ;;  %v1678_v51 = vsub.f32 %v1456_v63, %v854_v8 }
 0x1bc   :  { %v1685_v7 = vsub.f32 %v1519_v1, %v854_v8  ;;  %v1692_v36 = vsub.f32 %v1529_v54, %v854_v8  ;;  %v1698_v1 = vsub.f32 %v1532_v18, %v854_v8  ;;  %v1701_v31 = vsub.f32 %v1540_v23, %v854_v8 }
 0x1bd   :  { %v722_v25 = vadd.f32 %v721_v33, %v707_v27  ;;  %v870_v43 = vmul.f32 %v1672_v13, %v1672_v13  ;;  %v871_v48 = vmul.f32 %v1675_v39, %v1675_v39  ;;  %v872_v47 = vmul.f32 %v1678_v51, %v1678_v51 }
 0x1be   :  { %v873_v54 = vmul.f32 %v1685_v7, %v1685_v7  ;;  %v874_v32 = vmul.f32 %v1692_v36, %v1692_v36  ;;  %v875_v8 = vmul.f32 %v1698_v1, %v1698_v1  ;;  %v876_v27 = vmul.f32 %v1701_v31, %v1701_v31 }
 0x1bf   :  { %v723_v63 = vadd.f32 %v722_v25, %v708_v34  ;;  %v884_v16 = vadd.f32 %v871_v48, %v870_v43 }
 0x1c0   :  { %v853_v41 = vpop.xlane.xlu1 %852 }
 0x1c1   :  { %v855_v45 = vmul.f32 0.0012755102, %v853_v41  ;;  %v725_v38 = vadd.f32 %v724_v57, %v723_v63  ;;  %v885_v40 = vadd.f32 %v884_v16, %v872_v47  ;;  %v889_v63 = vsel %vm255_vm0, %v876_v27, 0.0 }
 0x1c3   :  { %726 = vadd.xlane.f32.xlu1 %v725_v38  ;;  %v886_v14 = vadd.f32 %v885_v40, %v873_v54  ;;  %v1708_v37 = vsub.f32 %v1442_v60, %v855_v45  ;;  %v1711_v18 = vsub.f32 %v1446_v53, %v855_v45  ;;  %v1714_v23 = vsub.f32 %v1460_v5, %v855_v45 }
 0x1c4   :  { %v1721_v34 = vsub.f32 %v1538_v11, %v855_v45  ;;  %v1728_v56 = vsub.f32 %v1550_v12, %v855_v45  ;;  %v1734_v11 = vsub.f32 %v1553_v26, %v855_v45  ;;  %v1737_v47 = vsub.f32 %v1561_v28, %v855_v45 }
 0x1c5   :  { %v887_v33 = vadd.f32 %v886_v14, %v874_v32  ;;  %v877_v60 = vmul.f32 %v1708_v37, %v1708_v37  ;;  %v878_v53 = vmul.f32 %v1711_v18, %v1711_v18  ;;  %v879_v25 = vmul.f32 %v1714_v23, %v1714_v23 }
 0x1c6   :  { %v880_v12 = vmul.f32 %v1721_v34, %v1721_v34  ;;  %v881_v38 = vmul.f32 %v1728_v56, %v1728_v56  ;;  %v882_v45 = vmul.f32 %v1734_v11, %v1734_v11  ;;  %v883_v32 = vmul.f32 %v1737_v47, %v1737_v47 }
 0x1c7   :  { %v888_v5 = vadd.f32 %v887_v33, %v875_v8  ;;  %v893_v43 = vadd.f32 %v878_v53, %v877_v60 }
 0x1c8   :  { %v1018_v48 = vpop.xlane.xlu2 %1017 }
 0x1c9   :  { %v1028_v16 = vmul.f32 0.0012755102, %v1018_v48  ;;  %v890_v41 = vadd.f32 %v889_v63, %v888_v5  ;;  %v894_v57 = vadd.f32 %v893_v43, %v879_v25  ;;  %v898_v5 = vsel %vm255_vm0, %v883_v32, 0.0 }
 0x1cb   :  { %891 = vadd.xlane.f32.xlu2 %v890_v41  ;;  %v895_v54 = vadd.f32 %v894_v57, %v880_v12  ;;  %v1744_v40 = vsub.f32 %v1448_v55, %v1028_v16  ;;  %v1747_v26 = vsub.f32 %v1452_v59, %v1028_v16  ;;  %v1750_v28 = vsub.f32 %v1462_v10, %v1028_v16 }
 0x1cc   :  { %v1757_v8 = vsub.f32 %v1559_v24, %v1028_v16  ;;  %v1764_v27 = vsub.f32 %v1571_v20, %v1028_v16  ;;  %v1770_v24 = vsub.f32 %v1574_v30, %v1028_v16  ;;  %v1773_v25 = vsub.f32 %v1582_v19, %v1028_v16 }
 0x1cd   :  { %v896_v14 = vadd.f32 %v895_v54, %v881_v38  ;;  %v1044_v55 = vmul.f32 %v1744_v40, %v1744_v40  ;;  %v1045_v59 = vmul.f32 %v1747_v26, %v1747_v26  ;;  %v1046_v33 = vmul.f32 %v1750_v28, %v1750_v28 }
 0x1ce   :  { %v1047_v20 = vmul.f32 %v1757_v8, %v1757_v8  ;;  %v1048_v41 = vmul.f32 %v1764_v27, %v1764_v27  ;;  %v1049_v16 = vmul.f32 %v1770_v24, %v1770_v24  ;;  %v1050_v38 = vmul.f32 %v1773_v25, %v1773_v25 }
 0x1cf   :  { %v897_v10 = vadd.f32 %v896_v14, %v882_v45  ;;  %v1058_v60 = vadd.f32 %v1045_v59, %v1044_v55 }
 0x1d0   :  { %v1027_v53 = vpop.xlane.xlu2 %1026  ;;  %v1063_v59 = vsel %vm255_vm0, %v1050_v38, 0.0  ;;  %v1831_v38 = vld [vmem:[%s1915_s2 + $0x10] sm:$0xff] }
 0x1d1   :  { %v1029_v43 = vmul.f32 0.0012755102, %v1027_v53  ;;  %v899_v48 = vadd.f32 %v898_v5, %v897_v10  ;;  %v1059_v63 = vadd.f32 %v1058_v60, %v1046_v33 }
 0x1d3   :  { %900 = vadd.xlane.f32.xlu1 %v899_v48  ;;  %v1060_v12 = vadd.f32 %v1059_v63, %v1047_v20  ;;  %v1780_v57 = vsub.f32 %v1454_v61, %v1029_v43  ;;  %v1783_v30 = vsub.f32 %v1458_v3, %v1029_v43  ;;  %v1786_v19 = vsub.f32 %v1464_v15, %v1029_v43 }
 0x1d4   :  { %v1793_v45 = vsub.f32 %v1580_v17, %v1029_v43  ;;  %v1800_v15 = vsub.f32 %v1592_v44, %v1029_v43  ;;  %v1806_v10 = vsub.f32 %v1599_v22, %v1029_v43  ;;  %v1809_v33 = vsub.f32 %v1595_v46, %v1029_v43 }
 0x1d5   :  { %v1061_v54 = vadd.f32 %v1060_v12, %v1048_v41  ;;  %v1051_v61 = vmul.f32 %v1780_v57, %v1780_v57  ;;  %v1052_v3 = vmul.f32 %v1783_v30, %v1783_v30  ;;  %v1053_v14 = vmul.f32 %v1786_v19, %v1786_v19  ;;  %v660_v12 = vld [vmem:[%s1915_s2] sm:$0xff] }
 0x1d6   :  { %1922 = vst [vmem:[#allocation11_spill] sm:$0xff] %v1800_v15  ;;  %v1054_v60 = vmul.f32 %v1793_v45, %v1793_v45  ;;  %v1055_v44 = vmul.f32 %v1800_v15, %v1800_v15  ;;  %v1057_v48 = vmul.f32 %v1806_v10, %v1806_v10  ;;  %v1056_v22 = vmul.f32 %v1809_v33, %v1809_v33 }
 0x1d7   :  { %v1062_v32 = vadd.f32 %v1061_v54, %v1049_v16  ;;  %v1067_v55 = vadd.f32 %v1052_v3, %v1051_v61  ;;  %1923 = vst [vmem:[#allocation12_spill] sm:$0xff] %v1806_v10  ;;  %v1917_v41 = vmov 1   ;;  %v661_v16 = vld [vmem:[%s1915_s2 + $0x8] sm:$0xff]  ;;  %v1324_v54 = vmov 0   ;;  %v1837_v3 = vld [vmem:[%s1915_s2 + $0x18] sm:$0xff] }
 0x1d8   :  { %1924 = vst [vmem:[#allocation13_spill] sm:$0xff] %v1809_v33  ;;  %v1072_v46 = vsel %vm255_vm0, %v1057_v48, 0.0  ;;  %1220 = vset.pattern.permute.xlu1 %v1917_v41  ;;  %1221 = vset.pattern.permute.xlu2 %v1917_v41 }
 0x1d9   :  { %v1064_v17 = vadd.f32 %v1063_v59, %v1062_v32  ;;  %v1068_v53 = vadd.f32 %v1067_v55, %v1053_v14  ;;  %1223 = vset.pattern.permute.xlu0 %v1324_v54 }
 0x1db   :  { %1065 = vadd.xlane.f32.xlu0 %v1064_v17  ;;  %v1069_v5 = vadd.f32 %v1068_v53, %v1054_v60 }
 0x1dd   :  { %v1070_v20 = vadd.f32 %v1069_v5, %v1055_v44 }
 0x1df   :  { %v1071_v63 = vadd.f32 %v1070_v20, %v1056_v22 }
 0x1e1   :  { %v1073_v43 = vadd.f32 %v1072_v46, %v1071_v63 }
 0x1e3   :  { %1074 = vadd.xlane.f32.xlu2 %v1073_v43 }
 0x1ec   :  { %780 = vperm.xlu1 %1220, %v660_v12  }
 0x1f4   :  { %959 = vperm.xlu1 %1220, %v1837_v3  }
 0x1fb   :  { %785 = vperm.xlu2 %1221, %v661_v16  }
 0x1fc   :  { %1224 = vset.pattern.permute.xlu1 %v1324_v54 }
 0x203   :  { %954 = vperm.xlu2 %1221, %v1831_v38  }
 0x20b   :  { %1222 = vset.pattern.permute.xlu2 %v1324_v54 }
 0x22e   :  { %v718_v61 = vpop.xlane.xlu0 %717 }
 0x22f   :  { %v728_v32 = vmul.f32 0.0012755102, %v718_v61 }
 0x231   :  { %v730_v14 = vadd.f32 1e-05, %v728_v32 }
 0x233   :  { %1227 = vrsqrt.f32 %v730_v14  ;;  %vm738_vm2 = vweird.f32 %v730_v14 }
 0x236   :  { %v727_v55 = vpop.xlane.xlu1 %726 }
 0x237   :  { %v729_v59 = vmul.f32 0.0012755102, %v727_v55 }
 0x239   :  { %v1228_v17 = vpop.eup %1227  ;;  %v731_v60 = vadd.f32 1e-05, %v729_v59 }
 0x23a   :  { %v733_v53 = vmul.f32 %v1228_v17, %v730_v14  ;;  %vm739_vm1 = vweird.f32 %v1228_v17 }
 0x23b   :  { %1229 = vrsqrt.f32 %v731_v60  ;;  %vm740_vm3 = vmor %vm738_vm2, %vm739_vm1  ;;  %vm748_vm5 = vweird.f32 %v731_v60 }
 0x23c   :  { %v734_v44 = vmul.f32 %v1228_v17, %v733_v53 }
 0x23e   :  { %v735_v5 = vmul.f32 0.5, %v734_v44  ;;  %v892_v48 = vpop.xlane.xlu2 %891 }
 0x23f   :  { %v902_v22 = vmul.f32 0.0012755102, %v892_v48 }
 0x240   :  { %v736_v20 = vsub.f32 1.5, %v735_v5 }
 0x241   :  { %v1230_v63 = vpop.eup %1229  ;;  %v904_v46 = vadd.f32 1e-05, %v902_v22 }
 0x242   :  { %v737_v43 = vmul.f32 %v1228_v17, %v736_v20  ;;  %v743_v61 = vmul.f32 %v1230_v63, %v731_v60  ;;  %vm749_vm4 = vweird.f32 %v1230_v63 }
 0x243   :  { %1231 = vrsqrt.f32 %v904_v46  ;;  %vm750_vm6 = vmor %vm748_vm5, %vm749_vm4  ;;  %vm912_vm8 = vweird.f32 %v904_v46 }
 0x244   :  { %v741_v32 = vsel %vm740_vm3, %v1228_v17, %v737_v43  ;;  %v744_v55 = vmul.f32 %v1230_v63, %v743_v61 }
 0x245   :  { %v752_v54 = vmul.f32 %v741_v32, %v660_v12 }
 0x246   :  { %v745_v41 = vmul.f32 0.5, %v744_v55  ;;  %v901_v59 = vpop.xlane.xlu1 %900 }
 0x247   :  { %v903_v10 = vmul.f32 0.0012755102, %v901_v59  ;;  %756 = vperm.xlu2 %1222, %v752_v54  }
 0x248   :  { %v746_v53 = vsub.f32 1.5, %v745_v41 }
 0x249   :  { %v1232_v44 = vpop.eup %1231  ;;  %v905_v48 = vadd.f32 1e-05, %v903_v10 }
 0x24a   :  { %v747_v5 = vmul.f32 %v1230_v63, %v746_v53  ;;  %v907_v33 = vmul.f32 %v1232_v44, %v904_v46  ;;  %vm913_vm7 = vweird.f32 %v1232_v44 }
 0x24b   :  { %1233 = vrsqrt.f32 %v905_v48  ;;  %vm914_vm9 = vmor %vm912_vm8, %vm913_vm7  ;;  %vm922_vm11 = vweird.f32 %v905_v48 }
 0x24c   :  { %v751_v14 = vsel %vm750_vm6, %v1230_v63, %v747_v5  ;;  %v908_v22 = vmul.f32 %v1232_v44, %v907_v33 }
 0x24d   :  { %v753_v20 = vmul.f32 %v751_v14, %v661_v16 }
 0x24e   :  { %v909_v15 = vmul.f32 0.5, %v908_v22  ;;  %v1066_v17 = vpop.xlane.xlu0 %1065 }
 0x24f   :  { %v1076_v43 = vmul.f32 0.0012755102, %v1066_v17  ;;  %761 = vperm.xlu0 %1223, %v753_v20  }
 0x250   :  { %v910_v12 = vsub.f32 1.5, %v909_v15 }
 0x251   :  { %v1234_v61 = vpop.eup %1233  ;;  %v1078_v32 = vadd.f32 1e-05, %v1076_v43 }
 0x252   :  { %v917_v41 = vmul.f32 %v1234_v61, %v905_v48  ;;  %v911_v55 = vmul.f32 %v1232_v44, %v910_v12  ;;  %vm923_vm10 = vweird.f32 %v1234_v61  ;;  %v1209_v12 = vld [vmem:[%s1915_s2 + $0x20] sm:$0xff] }
 0x253   :  { %1235 = vrsqrt.f32 %v1078_v32  ;;  %vm924_vm12 = vmor %vm922_vm11, %vm923_vm10  ;;  %vm1086_vm14 = vweird.f32 %v1078_v32 }
 0x254   :  { %v918_v10 = vmul.f32 %v1234_v61, %v917_v41  ;;  %v915_v60 = vsel %vm914_vm9, %v1232_v44, %v911_v55 }
 0x255   :  { %v926_v54 = vmul.f32 %v1831_v38, %v915_v60  ;;  %v1925_v60 = vmov 1  }
 0x256   :  { %v919_v63 = vmul.f32 0.5, %v918_v10  ;;  %v1075_v33 = vpop.xlane.xlu2 %1074 }
 0x257   :  { %v1077_v16 = vmul.f32 0.0012755102, %v1075_v33  ;;  %930 = vperm.xlu1 %1224, %v926_v54  }
 0x258   :  { %v920_v59 = vsub.f32 1.5, %v919_v63 }
 0x259   :  { %v1236_v53 = vpop.eup %1235  ;;  %v1079_v15 = vadd.f32 1e-05, %v1077_v16 }
 0x25a   :  { %v921_v5 = vmul.f32 %v1234_v61, %v920_v59  ;;  %v1081_v14 = vmul.f32 %v1236_v53, %v1078_v32  ;;  %vm1087_vm13 = vweird.f32 %v1236_v53  ;;  %v1210_v32 = vld [vmem:[%s1915_s2 + $0x28] sm:$0xff]  ;;  %s1325_s2 = smov [#allocation7]  }
 0x25b   :  { %1237 = vrsqrt.f32 %v1079_v15  ;;  %vm1088_vm15 = vmor %vm1086_vm14, %vm1087_vm13  ;;  %vm1096_vm2 = vweird.f32 %v1079_v15  ;;  %s1168_s9 = sshll.u32 %s1325_s2, 4  ;;  %s1169_s9 = int_to_ptr.vmem [resolvable:$true] %s1168_s9 }
 0x25c   :  { %v925_v46 = vsel %vm924_vm12, %v1234_v61, %v921_v5  ;;  %v1082_v22 = vmul.f32 %v1236_v53, %v1081_v14 }
 0x25d   :  { %v927_v20 = vmul.f32 %v1837_v3, %v925_v46 }
 0x25e   :  { %v1083_v44 = vmul.f32 0.5, %v1082_v22  ;;  %v786_v16 = vpop.permute.xlu2 %785  ;;  %v781_v5 = vpop.permute.xlu1 %780 }
 0x25f   :  { %935 = vperm.xlu0 %1223, %v927_v20  }
 0x260   :  { %v1084_v38 = vsub.f32 1.5, %v1083_v44 }
 0x261   :  { %v1238_v17 = vpop.eup %1237 }
 0x262   :  { %v1091_v43 = vmul.f32 %v1238_v17, %v1079_v15  ;;  %v1085_v48 = vmul.f32 %v1236_v53, %v1084_v38  ;;  %vm1097_vm1 = vweird.f32 %v1238_v17 }
 0x263   :  { %vm1098_vm3 = vmor %vm1096_vm2, %vm1097_vm1 }
 0x264   :  { %v1092_v41 = vmul.f32 %v1238_v17, %v1091_v43  ;;  %v1089_v55 = vsel %vm1088_vm15, %v1236_v53, %v1085_v48 }
 0x265   :  { %v1100_v10 = vmul.f32 %v1209_v12, %v1089_v55 }
 0x266   :  { %v1093_v61 = vmul.f32 0.5, %v1092_v41  ;;  %v1850_v59 = vpop.permute.xlu2 %954 }
 0x267   :  { %1225 = vset.pattern.permute.xlu0 %v1925_v60  ;;  %1104 = vperm.xlu2 %1222, %v1100_v10  }
 0x268   :  { %v1094_v3 = vsub.f32 1.5, %v1093_v61  ;;  %1128 = vperm.xlu0 %1225, %v1209_v12  }
 0x26a   :  { %v1095_v54 = vmul.f32 %v1238_v17, %v1094_v3 }
 0x26c   :  { %v1099_v63 = vsel %vm1098_vm3, %v1238_v17, %v1095_v54 }
 0x26d   :  { %v1101_v33 = vmul.f32 %v1210_v32, %v1099_v63 }
 0x26f   :  { %1109 = vperm.xlu1 %1224, %v1101_v33   ;;  %1226 = vset.pattern.permute.xlu2 %v1925_v60 }
 0x270   :  { %1133 = vperm.xlu2 %1226, %v1210_v32  }
 0x2a1   :  { %v757_v53 = vpop.permute.xlu2 %756 }
 0x2a2   :  { %v764_v14 = vmul.f32 %v757_v53, %v1605_v62  ;;  %v765_v15 = vmul.f32 %v757_v53, %v1608_v0  ;;  %v766_v46 = vmul.f32 %v757_v53, %v1611_v29  ;;  %v767_v22 = vmul.f32 %v757_v53, %v1614_v2  ;;  %v960_v0 = vpop.permute.xlu1 %959 }
 0x2a3   :  { %v768_v20 = vmul.f32 %v757_v53, %v1621_v9  ;;  %v769_v44 = vmul.f32 %v757_v53, %v1626_v50  ;;  %v770_v38 = vmul.f32 %v757_v53, %v1629_v49 }
 0x2a4   :  { %v788_v17 = vadd.f32 %v781_v5, %v764_v14  ;;  %v789_v43 = vadd.f32 %v781_v5, %v765_v15  ;;  %v790_v12 = vadd.f32 %v781_v5, %v766_v46  ;;  %v791_v48 = vadd.f32 %v781_v5, %v767_v22 }
 0x2a5   :  { %v792_v41 = vadd.f32 %v781_v5, %v768_v20  ;;  %v793_v55 = vadd.f32 %v781_v5, %v769_v44  ;;  %v794_v62 = vadd.f32 %v781_v5, %v770_v38 }
 0x2a6   :  { %802 = vst [vmem:[#allocation7] sm:$0xff] %v788_v17 }
 0x2a7   :  { %803 = vst [vmem:[#allocation7 + $0x8] sm:$0xff] %v789_v43 }
 0x2a8   :  { %804 = vst [vmem:[#allocation7 + $0x10] sm:$0xff] %v790_v12 }
 0x2a9   :  { %805 = vst [vmem:[#allocation7 + $0x18] sm:$0xff] %v791_v48 }
 0x2aa   :  { %806 = vst [vmem:[#allocation7 + $0x20] sm:$0xff] %v792_v41 }
 0x2ab   :  { %807 = vst [vmem:[#allocation7 + $0x28] sm:$0xff] %v793_v55 }
 0x2ac   :  { %808 = vst.msk [vmem:[#allocation7 + $0x30] sm:$0xff] %vm255_vm0, %v794_v62 }
 0x2c1   :  { %v762_v29 = vpop.permute.xlu0 %761 }
 0x2c2   :  { %v771_v2 = vmul.f32 %v762_v29, %v1636_v42  ;;  %v772_v9 = vmul.f32 %v762_v29, %v1639_v35  ;;  %v773_v50 = vmul.f32 %v762_v29, %v1642_v58  ;;  %v774_v49 = vmul.f32 %v762_v29, %v1649_v21 }
 0x2c3   :  { %v775_v10 = vmul.f32 %v762_v29, %v1656_v52  ;;  %v776_v61 = vmul.f32 %v762_v29, %v1662_v4  ;;  %v777_v60 = vmul.f32 %v762_v29, %v1665_v6 }
 0x2c4   :  { %v795_v3 = vadd.f32 %v786_v16, %v771_v2  ;;  %v796_v32 = vadd.f32 %v786_v16, %v772_v9  ;;  %v797_v54 = vadd.f32 %v786_v16, %v773_v50  ;;  %v798_v63 = vadd.f32 %v786_v16, %v774_v49 }
 0x2c5   :  { %v799_v33 = vadd.f32 %v786_v16, %v775_v10  ;;  %v800_v53 = vadd.f32 %v786_v16, %v776_v61  ;;  %v801_v42 = vadd.f32 %v786_v16, %v777_v60 }
 0x2c6   :  { %809 = vst [vmem:[#allocation7 + $0x38] sm:$0xff] %v795_v3 }
 0x2c7   :  { %810 = vst [vmem:[#allocation7 + $0x40] sm:$0xff] %v796_v32  ;;  %v1927_v32 = vld [vmem:[#allocation13_spill] sm:$0xff] }
 0x2c8   :  { %811 = vst [vmem:[#allocation7 + $0x48] sm:$0xff] %v797_v54 }
 0x2c9   :  { %812 = vst [vmem:[#allocation7 + $0x50] sm:$0xff] %v798_v63  ;;  %v931_v35 = vpop.permute.xlu1 %930  ;;  %v1928_v63 = vld [vmem:[#allocation12_spill] sm:$0xff] }
 0x2ca   :  { %813 = vst [vmem:[#allocation7 + $0x58] sm:$0xff] %v799_v33  ;;  %v938_v58 = vmul.f32 %v931_v35, %v1672_v13  ;;  %v939_v21 = vmul.f32 %v931_v35, %v1675_v39  ;;  %v940_v52 = vmul.f32 %v931_v35, %v1678_v51  ;;  %v941_v4 = vmul.f32 %v931_v35, %v1685_v7 }
 0x2cb   :  { %814 = vst [vmem:[#allocation7 + $0x60] sm:$0xff] %v800_v53  ;;  %v942_v6 = vmul.f32 %v931_v35, %v1692_v36  ;;  %v943_v5 = vmul.f32 %v931_v35, %v1698_v1  ;;  %v944_v16 = vmul.f32 %v931_v35, %v1701_v31 }
 0x2cc   :  { %815 = vst.msk [vmem:[#allocation7 + $0x68] sm:$0xff] %vm255_vm0, %v801_v42  ;;  %v962_v14 = vadd.f32 %v1850_v59, %v938_v58  ;;  %v963_v15 = vadd.f32 %v1850_v59, %v939_v21  ;;  %v964_v13 = vadd.f32 %v1850_v59, %v940_v52  ;;  %v965_v39 = vadd.f32 %v1850_v59, %v941_v4 }
 0x2cd   :  { %v966_v51 = vadd.f32 %v1850_v59, %v942_v6  ;;  %v967_v7 = vadd.f32 %v1850_v59, %v943_v5  ;;  %v968_v36 = vadd.f32 %v1850_v59, %v944_v16 }
 0x2ce   :  { %976 = vst [vmem:[#allocation7 + $0x70] sm:$0xff] %v962_v14 }
 0x2cf   :  { %977 = vst [vmem:[#allocation7 + $0x78] sm:$0xff] %v963_v15 }
 0x2d0   :  { %978 = vst [vmem:[#allocation7 + $0x80] sm:$0xff] %v964_v13 }
 0x2d1   :  { %979 = vst [vmem:[#allocation7 + $0x88] sm:$0xff] %v965_v39  ;;  %v936_v1 = vpop.permute.xlu0 %935 }
 0x2d2   :  { %980 = vst [vmem:[#allocation7 + $0x90] sm:$0xff] %v966_v51  ;;  %v945_v31 = vmul.f32 %v936_v1, %v1708_v37  ;;  %v946_v46 = vmul.f32 %v936_v1, %v1711_v18  ;;  %v947_v22 = vmul.f32 %v936_v1, %v1714_v23  ;;  %v948_v20 = vmul.f32 %v936_v1, %v1721_v34  ;;  %v1105_v37 = vpop.permute.xlu2 %1104 }
 0x2d3   :  { %981 = vst [vmem:[#allocation7 + $0x98] sm:$0xff] %v967_v7  ;;  %v949_v44 = vmul.f32 %v936_v1, %v1728_v56  ;;  %v950_v38 = vmul.f32 %v936_v1, %v1734_v11  ;;  %v951_v59 = vmul.f32 %v936_v1, %v1737_v47  ;;  %v1112_v34 = vmul.f32 %v1105_v37, %v1744_v40 }
 0x2d4   :  { %982 = vst.msk [vmem:[#allocation7 + $0xa0] sm:$0xff] %vm255_vm0, %v968_v36  ;;  %v969_v17 = vadd.f32 %v960_v0, %v945_v31  ;;  %v970_v43 = vadd.f32 %v960_v0, %v946_v46  ;;  %v971_v12 = vadd.f32 %v960_v0, %v947_v22  ;;  %v972_v48 = vadd.f32 %v960_v0, %v948_v20 }
 0x2d5   :  { %v973_v41 = vadd.f32 %v960_v0, %v949_v44  ;;  %v974_v18 = vadd.f32 %v960_v0, %v950_v38  ;;  %v975_v23 = vadd.f32 %v960_v0, %v951_v59  ;;  %v1113_v56 = vmul.f32 %v1105_v37, %v1747_v26 }
 0x2d6   :  { %983 = vst [vmem:[#allocation7 + $0xa8] sm:$0xff] %v969_v17  ;;  %v1114_v11 = vmul.f32 %v1105_v37, %v1750_v28  ;;  %v1115_v55 = vmul.f32 %v1105_v37, %v1757_v8  ;;  %v1116_v62 = vmul.f32 %v1105_v37, %v1764_v27  ;;  %v1117_v0 = vmul.f32 %v1105_v37, %v1770_v24 }
 0x2d7   :  { %984 = vst [vmem:[#allocation7 + $0xb0] sm:$0xff] %v970_v43  ;;  %v1118_v40 = vmul.f32 %v1105_v37, %v1773_v25  ;;  %v1926_v25 = vld [vmem:[#allocation11_spill] sm:$0xff] }
 0x2d8   :  { %985 = vst [vmem:[#allocation7 + $0xb8] sm:$0xff] %v971_v12 }
 0x2d9   :  { %986 = vst [vmem:[#allocation7 + $0xc0] sm:$0xff] %v972_v48 }
 0x2da   :  { %987 = vst [vmem:[#allocation7 + $0xc8] sm:$0xff] %v973_v41  ;;  %v1129_v47 = vpop.permute.xlu0 %1128  ;;  %v1134_v27 = vpop.permute.xlu2 %1133 }
 0x2db   :  { %988 = vst [vmem:[#allocation7 + $0xd0] sm:$0xff] %v974_v18  ;;  %v1136_v29 = vadd.f32 %v1129_v47, %v1112_v34  ;;  %v1137_v2 = vadd.f32 %v1129_v47, %v1113_v56  ;;  %v1138_v9 = vadd.f32 %v1129_v47, %v1114_v11  ;;  %v1139_v50 = vadd.f32 %v1129_v47, %v1115_v55 }
 0x2dc   :  { %989 = vst.msk [vmem:[#allocation7 + $0xd8] sm:$0xff] %vm255_vm0, %v975_v23  ;;  %v1140_v26 = vadd.f32 %v1129_v47, %v1116_v62  ;;  %v1141_v28 = vadd.f32 %v1129_v47, %v1117_v0  ;;  %v1142_v49 = vadd.f32 %v1129_v47, %v1118_v40 }
 0x2dd   :  { %1150 = vst [vmem:[#allocation7 + $0xe0] sm:$0xff] %v1136_v29 }
 0x2de   :  { %1151 = vst [vmem:[#allocation7 + $0xe8] sm:$0xff] %v1137_v2 }
 0x2df   :  { %1152 = vst [vmem:[#allocation7 + $0xf0] sm:$0xff] %v1138_v9 }
 0x2e0   :  { %1153 = vst [vmem:[#allocation7 + $0xf8] sm:$0xff] %v1139_v50 }
 0x2e1   :  { %1154 = vst [vmem:[#allocation7 + $0x100] sm:$0xff] %v1140_v26  ;;  %v1110_v8 = vpop.permute.xlu1 %1109 }
 0x2e2   :  { %1155 = vst [vmem:[#allocation7 + $0x108] sm:$0xff] %v1141_v28  ;;  %v1119_v10 = vmul.f32 %v1110_v8, %v1780_v57  ;;  %v1120_v61 = vmul.f32 %v1110_v8, %v1783_v30  ;;  %v1121_v24 = vmul.f32 %v1110_v8, %v1786_v19  ;;  %v1122_v60 = vmul.f32 %v1110_v8, %v1793_v45 }
 0x2e3   :  { %1156 = vst.msk [vmem:[#allocation7 + $0x110] sm:$0xff] %vm255_vm0, %v1142_v49  ;;  %v1123_v3 = vmul.f32 %v1110_v8, %v1926_v25  ;;  %v1124_v54 = vmul.f32 %v1110_v8, %v1927_v32  ;;  %v1125_v33 = vmul.f32 %v1110_v8, %v1928_v63 }
 0x2e4   :  { %v1143_v53 = vadd.f32 %v1134_v27, %v1119_v10  ;;  %v1144_v42 = vadd.f32 %v1134_v27, %v1120_v61  ;;  %v1145_v35 = vadd.f32 %v1134_v27, %v1121_v24  ;;  %v1146_v58 = vadd.f32 %v1134_v27, %v1122_v60 }
 0x2e5   :  { %v1147_v21 = vadd.f32 %v1134_v27, %v1123_v3  ;;  %v1148_v57 = vadd.f32 %v1134_v27, %v1124_v54  ;;  %v1149_v30 = vadd.f32 %v1134_v27, %v1125_v33 }
 0x2e6   :  { %1157 = vst [vmem:[#allocation7 + $0x118] sm:$0xff] %v1143_v53 }
 0x2e7   :  { %1158 = vst [vmem:[#allocation7 + $0x120] sm:$0xff] %v1144_v42 }
 0x2e8   :  { %1159 = vst [vmem:[#allocation7 + $0x128] sm:$0xff] %v1145_v35 }
 0x2e9   :  { %1160 = vst [vmem:[#allocation7 + $0x130] sm:$0xff] %v1146_v58 }
 0x2ea   :  { %1161 = vst [vmem:[#allocation7 + $0x138] sm:$0xff] %v1147_v21 }
 0x2eb   :  { %1162 = vst [vmem:[#allocation7 + $0x140] sm:$0xff] %v1148_v57 }
 0x2ec   :  { %1163 = vst.msk [vmem:[#allocation7 + $0x148] sm:$0xff] %vm255_vm0, %v1149_v30 }
 0x2ed   :  { %1176 = dma.vmem_to_hbm [thread:$0]  %s1169_s9, 5376, %s1171_s12, [#allocation4], %s1318_s20, %s1318_s20, %s1319_s21  }
 0x2ee   :  { %1315 = dma.done.wait [#allocation4], 5376  }
 0x2ef   :  { %1316 = vsyncadd [#allocation4], 4294961920 }
 0x2f0   :  { %1181 = vsyncpa [#allocation3], 1 }
 0x2f1   :  { %1182 = vsyncpa [#allocation6], 1 }
 0x2f2   :  { %1183 = vsyncpa [#allocation4], 1 }

</bundles_post_ra>
